<compile_context>
chip_gen: v7x
topology: tpu7x:2x2x1
jax: 0.10.0
libtpu: 0.0.40
codegen_flags: <defaults>
</compile_context>

<pallas_src>
import functools

import numpy as np

import jax
import jax.numpy as jnp
from jax.experimental import pallas as pl
from jax.experimental.pallas import tpu as pltpu


_MXU_DTYPE = jnp.bfloat16   # conv / selector matmul operand dtype (f32 accumulation)


# --------------------------------------------------------------------------
# In-kernel helpers (lane-dense (C, flat-HW) activations)
# --------------------------------------------------------------------------
def _conv3x3(a, w_ref, b_ref, patch_ref, mask, w_img, relu):
    """3x3 'same' conv of a (Cin, L) f32 activation as one fat MXU matmul.

    Taps are produced with pltpu.roll along the flattened lane axis (shift =
    -(dh*w_img + dw)) and multiplied by the precomputed (9, L) boundary mask
    (implements the zero 'same' padding; also kills any roll wrap-around).
    Each tap is written into the bf16 im2col scratch already cast.
    Returns (Cout, L) f32.
    """
    cin, L = a.shape
    for kh in range(3):
        for kw in range(3):
            t = kh * 3 + kw
            d = (kh - 1) * w_img + (kw - 1)
            if d == 0:                                  # centre tap: no shift
                tap = a
            else:
                tap = pltpu.roll(a, (-d) % L, axis=1) * mask[t:t + 1, :]
            patch_ref[t * cin:(t + 1) * cin, :] = tap.astype(patch_ref.dtype)
    y = jnp.dot(w_ref[...], patch_ref[0:9 * cin, :],
                preferred_element_type=jnp.float32)
    y = y + b_ref[...]                                  # (Cout, 1) bias
    return jnp.maximum(y, 0.0) if relu else y


# --------------------------------------------------------------------------
# Fused kernel: conv1+pool -> conv2 -> upsample -> conv3 -> channel split
# --------------------------------------------------------------------------
def _coc_fgbg_kernel(x_ref, w1_ref, b1_ref, w2_ref, b2_ref, w3_ref, b3_ref,
                     mf_ref, mh_ref, ps_ref, us_ref,
                     o_ref, pbig_ref, phalf_ref, *, H, W, last_act):
    HW = H * W
    wp = W // 2
    mask_full = mf_ref[...]          # (9, HW)   f32 boundary-validity masks
    mask_half = mh_ref[...]          # (9, HW4P)
    pool_sel = ps_ref[...]           # (HW, HW4P) bf16 0/1 compaction selector
    up_sel = us_ref[...]             # (HW4P, HW) bf16 0/1 upsample selector

    # batch_tile is a small static count -> a simple unrolled Python loop.
    for b in range(x_ref.shape[0]):
        x = x_ref[b].astype(jnp.float32)                               # (cin_pad, HW)
        h1 = _conv3x3(x, w1_ref, b1_ref, pbig_ref, mask_full, W, relu=True)

        # 2x2 / stride-2 max pool: neighbour maxima via lane rolls.  With even
        # H, W the compacted even-(h, w) outputs never read a wrapped (or
        # out-of-row) neighbour, so no masking is required here.
        m = jnp.maximum(h1, pltpu.roll(h1, (HW - 1) % HW, axis=1))     # right
        m = jnp.maximum(m, pltpu.roll(m, (HW - W) % HW, axis=1))       # down
        hpool = jnp.dot(m.astype(pool_sel.dtype), pool_sel,
                        preferred_element_type=jnp.float32)            # (hid, HW4P)

        h2 = _conv3x3(hpool, w2_ref, b2_ref, phalf_ref, mask_half, wp, relu=True)

        # nearest-neighbour 2x upsample via precomputed 0/1 selector matmul.
        hup = jnp.dot(h2.astype(up_sel.dtype), up_sel,
                      preferred_element_type=jnp.float32)              # (hid, HW)

        y = _conv3x3(hup, w3_ref, b3_ref, pbig_ref, mask_full, W, relu=False)
        if last_act:   # optional ReLU on the CoC channel (row 1) only
            row = jax.lax.broadcasted_iota(jnp.int32, y.shape, 0)
            y = jnp.where(row == 1, jnp.maximum(y, 0.0), y)
        o_ref[b] = y.astype(o_ref.dtype)


# --------------------------------------------------------------------------
# Parameters (deterministic in-script init; HWIO conv weights)
# --------------------------------------------------------------------------
def init_poolnet_params(key, in_channels=4, hidden=32, out_channels=2):
    def conv_init(k, cin, cout):
        kw_, kb_ = jax.random.split(k)
        w = jax.random.normal(kw_, (3, 3, cin, cout), jnp.float32) * 0.1
        b = jax.random.normal(kb_, (cout,), jnp.float32) * 0.01
        return w, b

    k1, k2, k3 = jax.random.split(key, 3)
    return {"conv1": conv_init(k1, in_channels, hidden),
            "conv2": conv_init(k2, hidden, hidden),
            "conv3": conv_init(k3, hidden, out_channels)}


# --------------------------------------------------------------------------
# Public wrapper: CoCFgbgLayeredPoolNet.forward(x) -> (coc, fgbg)
# --------------------------------------------------------------------------
@functools.partial(jax.jit, static_argnames=("last_act", "batch_tile"))
def coc_fgbg_layered_poolnet(params, x_nchw, last_act=False, batch_tile=1):
    N, Cin, H, W = x_nchw.shape
    HW = H * W
    assert H % 2 == 0 and W % 2 == 0, "2x2 pooling needs even H, W"
    assert HW % 128 == 0, "flattened spatial axis must be lane-aligned (H*W % 128 == 0)"
    assert N % batch_tile == 0, "batch must be divisible by batch_tile"

    w1, b1 = params["conv1"]
    w2, b2 = params["conv2"]
    w3, b3 = params["conv3"]
    hidden = w1.shape[-1]
    cout = w3.shape[-1]
    assert hidden % 16 == 0, "hidden channels must be a multiple of 16 (bf16 tile)"

    # Channel padding: cin -> multiple of 16 so every bf16 im2col tap store is
    # packed-tile aligned; cout -> 8 so weight loads / output stores are
    # unmasked full-sublane accesses.
    cin_pad = ((Cin + 15) // 16) * 16
    cout_pad = max(8, ((cout + 7) // 8) * 8)

    hp, wp = H // 2, W // 2
    HW4 = hp * wp
    HW4P = ((HW4 + 127) // 128) * 128     # half-res lane width padded to 128-multiple

    # ---- trace-time constants: boundary masks + 0/1 selectors (numpy) ------
    pcol = np.arange(HW)
    ph, pw = pcol // W, pcol % W
    qcol = np.arange(HW4P)
    qh, qw = qcol // wp, qcol % wp
    qvalid = qcol < HW4

    mask_full = np.zeros((9, HW), np.float32)
    mask_half = np.zeros((9, HW4P), np.float32)
    for kh in range(3):
        for kw in range(3):
            dh, dw = kh - 1, kw - 1
            t = kh * 3 + kw
            mask_full[t] = ((ph + dh >= 0) & (ph + dh < H) &
                            (pw + dw >= 0) & (pw + dw < W))
            mask_half[t] = (qvalid & (qh + dh >= 0) & (qh + dh < hp) &
                            (qw + dw >= 0) & (qw + dw < wp))

    pool_sel = np.zeros((HW, HW4P), np.float32)      # even-(h,w) -> dense half-res
    q_small = np.arange(HW4)
    pool_sel[2 * W * (q_small // wp) + 2 * (q_small % wp), q_small] = 1.0
    up_sel = np.zeros((HW4P, HW), np.float32)        # half-res -> nearest 2x
    up_sel[(ph // 2) * wp + (pw // 2), pcol] = 1.0

    mask_full_j = jnp.asarray(mask_full)
    mask_half_j = jnp.asarray(mask_half)
    pool_sel_j = jnp.asarray(pool_sel, _MXU_DTYPE)
    up_sel_j = jnp.asarray(up_sel, _MXU_DTYPE)

    # ---- operands: bf16 lane-dense input, bf16 matmul weights, f32 biases ---
    x_flat = x_nchw.reshape(N, Cin, HW).astype(_MXU_DTYPE)
    if cin_pad != Cin:
        x_flat = jnp.pad(x_flat, ((0, 0), (0, cin_pad - Cin), (0, 0)))
        w1 = jnp.pad(w1, ((0, 0), (0, 0), (0, cin_pad - Cin), (0, 0)))
    if cout_pad != cout:
        w3 = jnp.pad(w3, ((0, 0), (0, 0), (0, 0), (0, cout_pad - cout)))
        b3 = jnp.pad(b3, ((0, cout_pad - cout),))

    # (Cout, 9*Cin) matmul weights; row order = tap-major then input channel,
    # matching the in-kernel im2col ordering.
    w1m = w1.reshape(9 * cin_pad, hidden).T.astype(_MXU_DTYPE)
    w2m = w2.reshape(9 * hidden, hidden).T.astype(_MXU_DTYPE)
    w3m = w3.reshape(9 * hidden, cout_pad).T.astype(_MXU_DTYPE)
    b1c = b1.reshape(hidden, 1).astype(jnp.float32)
    b2c = b2.reshape(hidden, 1).astype(jnp.float32)
    b3c = b3.reshape(cout_pad, 1).astype(jnp.float32)

    kernel = functools.partial(_coc_fgbg_kernel, H=H, W=W, last_act=last_act)
    out_flat = pl.pallas_call(
        kernel,
        out_shape=jax.ShapeDtypeStruct((N, cout_pad, HW), jnp.float32),
        grid=(N // batch_tile,),
        in_specs=[
            pl.BlockSpec((batch_tile, cin_pad, HW), lambda n: (n, 0, 0)),  # x
            pl.BlockSpec((hidden, 9 * cin_pad), lambda n: (0, 0)),         # w1
            pl.BlockSpec((hidden, 1), lambda n: (0, 0)),                   # b1
            pl.BlockSpec((hidden, 9 * hidden), lambda n: (0, 0)),          # w2
            pl.BlockSpec((hidden, 1), lambda n: (0, 0)),                   # b2
            pl.BlockSpec((cout_pad, 9 * hidden), lambda n: (0, 0)),        # w3
            pl.BlockSpec((cout_pad, 1), lambda n: (0, 0)),                 # b3
            pl.BlockSpec((9, HW), lambda n: (0, 0)),                       # mask_full
            pl.BlockSpec((9, HW4P), lambda n: (0, 0)),                     # mask_half
            pl.BlockSpec((HW, HW4P), lambda n: (0, 0)),                    # pool_sel
            pl.BlockSpec((HW4P, HW), lambda n: (0, 0)),                    # up_sel
        ],
        out_specs=pl.BlockSpec((batch_tile, cout_pad, HW), lambda n: (n, 0, 0)),
        scratch_shapes=[
            # conv1 and conv3 im2col are never live at the same time -> shared.
            pltpu.VMEM((max(9 * cin_pad, 9 * hidden), HW), _MXU_DTYPE),
            pltpu.VMEM((9 * hidden, HW4P), _MXU_DTYPE),    # conv2 im2col
        ],
        compiler_params=pltpu.CompilerParams(
            dimension_semantics=("parallel",),        # batch split across TCs
            vmem_limit_bytes=32 * 1024 * 1024),       # v5e default is only 16 MiB
    )(x_flat, w1m, b1c, w2m, b2c, w3m, b3c,
      mask_full_j, mask_half_j, pool_sel_j, up_sel_j)

    out = out_flat.reshape(N, cout_pad, H, W)   # free reshape: already NCHW order
    fgbg = out[:, 0:1]
    coc = out[:, 1:2]
    return coc, fgbg                            # forward returns (coc, fgbg)


# --------------------------------------------------------------------------
# Pure NumPy float64 reference of the same synthesized forward pass
# --------------------------------------------------------------------------
def _reference_forward(params, x_nchw, last_act=False):
    def conv3x3(x, w, b, relu):
        n, c, hh, ww = x.shape
        co = w.shape[-1]
        xp = np.pad(x, ((0, 0), (0, 0), (1, 1), (1, 1)))
        y = np.zeros((n, co, hh, ww), np.float64)
        for kh in range(3):
            for kw in range(3):
                patch = xp[:, :, kh:kh + hh, kw:kw + ww]
                y += np.einsum("nchw,co->nohw", patch, w[kh, kw])
        y += b.reshape(1, co, 1, 1)
        return np.maximum(y, 0.0) if relu else y

    x = np.asarray(x_nchw, np.float64)
    w1, b1 = (np.asarray(a, np.float64) for a in params["conv1"])
    w2, b2 = (np.asarray(a, np.float64) for a in params["conv2"])
    w3, b3 = (np.asarray(a, np.float64) for a in params["conv3"])

    h = conv3x3(x, w1, b1, relu=True)
    n, c, hh, ww = h.shape
    h = h.reshape(n, c, hh // 2, 2, ww // 2, 2).max(axis=(3, 5))   # 2x2 max pool
    h = conv3x3(h, w2, b2, relu=True)
    h = np.repeat(np.repeat(h, 2, axis=2), 2, axis=3)              # nearest x2
    out = conv3x3(h, w3, b3, relu=False)
    fgbg, coc = out[:, 0:1], out[:, 1:2]
    if last_act:
        coc = np.maximum(coc, 0.0)
    return coc, fgbg


if __name__ == "__main__":
    key = jax.random.PRNGKey(0)
    k_params, k_x = jax.random.split(key)

    N, C, H, W = 2, 4, 16, 16
    x = jax.random.normal(k_x, (N, C, H, W), jnp.float32)
    params = init_poolnet_params(k_params, in_channels=C, hidden=32,
                                 out_channels=2)

    coc, fgbg = coc_fgbg_layered_poolnet(params, x, last_act=False)
    jax.block_until_ready((coc, fgbg))
    assert coc.shape == (N, 1, H, W) and fgbg.shape == (N, 1, H, W)

    # Numerical sanity check vs a float64 NumPy reference.  The kernel uses
    # bf16 MXU operands (input, im2col patches, weights, selectors) across
    # three conv layers, so allow a loose absolute tolerance on O(1) outputs.
    coc_ref, fgbg_ref = _reference_forward(params, x, last_act=False)
    err = max(np.max(np.abs(np.asarray(coc, np.float64) - coc_ref)),
              np.max(np.abs(np.asarray(fgbg, np.float64) - fgbg_ref)))
    assert err < 2e-1, f"mismatch vs reference: max abs err {err}"

    print("KERNEL_OK")
</pallas_src>

<mosaic_0001>
module attributes {stable_mosaic.version = 11 : i64} {
  func.func @_coc_fgbg_kernel(%arg0: i32, %arg1: memref<1x16x256xbf16, #tpu.memory_space<vmem>>, %arg2: memref<32x144xbf16, #tpu.memory_space<vmem>>, %arg3: memref<32x1xf32, #tpu.memory_space<vmem>>, %arg4: memref<32x288xbf16, #tpu.memory_space<vmem>>, %arg5: memref<32x1xf32, #tpu.memory_space<vmem>>, %arg6: memref<8x288xbf16, #tpu.memory_space<vmem>>, %arg7: memref<8x1xf32, #tpu.memory_space<vmem>>, %arg8: memref<9x256xf32, #tpu.memory_space<vmem>>, %arg9: memref<9x128xf32, #tpu.memory_space<vmem>>, %arg10: memref<256x128xbf16, #tpu.memory_space<vmem>>, %arg11: memref<128x256xbf16, #tpu.memory_space<vmem>>, %arg12: memref<1x8x256xf32, #tpu.memory_space<vmem>>, %arg13: memref<288x256xbf16, #tpu.memory_space<vmem>>, %arg14: memref<288x128xbf16, #tpu.memory_space<vmem>>) attributes {dimension_semantics = [#tpu.dimension_semantics<parallel>], iteration_bounds = array<i64: 2>, scalar_prefetch = 0 : i64, scratch_operands = 2 : i64, tpu.core_type = #tpu.core_type<tc>, window_params = [{transform_indices = @transform_0, window_bounds = array<i64: 1, 16, 256>}, {pipeline_mode = #tpu.pipeline_mode<synchronous>, transform_indices = @transform_1, window_bounds = array<i64: 32, 144>}, {pipeline_mode = #tpu.pipeline_mode<synchronous>, transform_indices = @transform_2, window_bounds = array<i64: 32, 1>}, {pipeline_mode = #tpu.pipeline_mode<synchronous>, transform_indices = @transform_3, window_bounds = array<i64: 32, 288>}, {pipeline_mode = #tpu.pipeline_mode<synchronous>, transform_indices = @transform_4, window_bounds = array<i64: 32, 1>}, {pipeline_mode = #tpu.pipeline_mode<synchronous>, transform_indices = @transform_5, window_bounds = array<i64: 8, 288>}, {pipeline_mode = #tpu.pipeline_mode<synchronous>, transform_indices = @transform_6, window_bounds = array<i64: 8, 1>}, {pipeline_mode = #tpu.pipeline_mode<synchronous>, transform_indices = @transform_7, window_bounds = array<i64: 9, 256>}, {pipeline_mode = #tpu.pipeline_mode<synchronous>, transform_indices = @transform_8, window_bounds = array<i64: 9, 128>}, {pipeline_mode = #tpu.pipeline_mode<synchronous>, transform_indices = @transform_9, window_bounds = array<i64: 256, 128>}, {pipeline_mode = #tpu.pipeline_mode<synchronous>, transform_indices = @transform_10, window_bounds = array<i64: 128, 256>}, {transform_indices = @transform_11, window_bounds = array<i64: 1, 8, 256>}]} {
    %c0 = arith.constant 0 : index
    %c0_0 = arith.constant 0 : index
    %0 = vector.load %arg8[%c0, %c0_0] : memref<9x256xf32, #tpu.memory_space<vmem>>, vector<9x256xf32>
    %c0_1 = arith.constant 0 : index
    %c0_2 = arith.constant 0 : index
    %1 = vector.load %arg9[%c0_1, %c0_2] : memref<9x128xf32, #tpu.memory_space<vmem>>, vector<9x128xf32>
    %c0_3 = arith.constant 0 : index
    %c0_4 = arith.constant 0 : index
    %2 = vector.load %arg10[%c0_3, %c0_4] : memref<256x128xbf16, #tpu.memory_space<vmem>>, vector<256x128xbf16>
    %c0_5 = arith.constant 0 : index
    %c0_6 = arith.constant 0 : index
    %3 = vector.load %arg11[%c0_5, %c0_6] : memref<128x256xbf16, #tpu.memory_space<vmem>>, vector<128x256xbf16>
    %c0_7 = arith.constant 0 : index
    %c0_8 = arith.constant 0 : index
    %c0_9 = arith.constant 0 : index
    %4 = vector.load %arg1[%c0_7, %c0_8, %c0_9] : memref<1x16x256xbf16, #tpu.memory_space<vmem>>, vector<1x16x256xbf16>
    %5 = vector.shape_cast %4 : vector<1x16x256xbf16> to vector<16x256xbf16>
    %6 = arith.extf %5 : vector<16x256xbf16> to vector<16x256xf32>
    %c17_i32 = arith.constant 17 : i32
    %7 = tpu.dynamic_rotate %6 by %c17_i32 dim 1 : vector<16x256xf32>, i32 -> vector<16x256xf32>
    %8 = vector.extract_strided_slice %0 {offsets = [0, 0], sizes = [1, 256], strides = [1, 1]} : vector<9x256xf32> to vector<1x256xf32>
    %9 = vector.broadcast %8 : vector<1x256xf32> to vector<16x256xf32>
    %10 = arith.mulf %7, %9 : vector<16x256xf32>
    %11 = arith.truncf %10 : vector<16x256xf32> to vector<16x256xbf16>
    %c0_10 = arith.constant 0 : index
    %c0_11 = arith.constant 0 : index
    %12 = vector.load %arg13[%c0_10, %c0_11] : memref<288x256xbf16, #tpu.memory_space<vmem>>, vector<16x256xbf16>
    tpu.vector_store %arg13[%c0_10, %c0_11], %11 {strides = array<i32>} : memref<288x256xbf16, #tpu.memory_space<vmem>>, vector<16x256xbf16>,
    %c16_i32 = arith.constant 16 : i32
    %13 = tpu.dynamic_rotate %6 by %c16_i32 dim 1 : vector<16x256xf32>, i32 -> vector<16x256xf32>
    %14 = vector.extract_strided_slice %0 {offsets = [1, 0], sizes = [1, 256], strides = [1, 1]} : vector<9x256xf32> to vector<1x256xf32>
    %15 = vector.broadcast %14 : vector<1x256xf32> to vector<16x256xf32>
    %16 = arith.mulf %13, %15 : vector<16x256xf32>
    %17 = arith.truncf %16 : vector<16x256xf32> to vector<16x256xbf16>
    %c16 = arith.constant 16 : index
    %c0_12 = arith.constant 0 : index
    %18 = vector.load %arg13[%c16, %c0_12] : memref<288x256xbf16, #tpu.memory_space<vmem>>, vector<16x256xbf16>
    tpu.vector_store %arg13[%c16, %c0_12], %17 {strides = array<i32>} : memref<288x256xbf16, #tpu.memory_space<vmem>>, vector<16x256xbf16>,
    %c15_i32 = arith.constant 15 : i32
    %19 = tpu.dynamic_rotate %6 by %c15_i32 dim 1 : vector<16x256xf32>, i32 -> vector<16x256xf32>
    %20 = vector.extract_strided_slice %0 {offsets = [2, 0], sizes = [1, 256], strides = [1, 1]} : vector<9x256xf32> to vector<1x256xf32>
    %21 = vector.broadcast %20 : vector<1x256xf32> to vector<16x256xf32>
    %22 = arith.mulf %19, %21 : vector<16x256xf32>
    %23 = arith.truncf %22 : vector<16x256xf32> to vector<16x256xbf16>
    %c32 = arith.constant 32 : index
    %c0_13 = arith.constant 0 : index
    %24 = vector.load %arg13[%c32, %c0_13] : memref<288x256xbf16, #tpu.memory_space<vmem>>, vector<16x256xbf16>
    tpu.vector_store %arg13[%c32, %c0_13], %23 {strides = array<i32>} : memref<288x256xbf16, #tpu.memory_space<vmem>>, vector<16x256xbf16>,
    %c1_i32 = arith.constant 1 : i32
    %25 = tpu.dynamic_rotate %6 by %c1_i32 dim 1 : vector<16x256xf32>, i32 -> vector<16x256xf32>
    %26 = vector.extract_strided_slice %0 {offsets = [3, 0], sizes = [1, 256], strides = [1, 1]} : vector<9x256xf32> to vector<1x256xf32>
    %27 = vector.broadcast %26 : vector<1x256xf32> to vector<16x256xf32>
    %28 = arith.mulf %25, %27 : vector<16x256xf32>
    %29 = arith.truncf %28 : vector<16x256xf32> to vector<16x256xbf16>
    %c48 = arith.constant 48 : index
    %c0_14 = arith.constant 0 : index
    %30 = vector.load %arg13[%c48, %c0_14] : memref<288x256xbf16, #tpu.memory_space<vmem>>, vector<16x256xbf16>
    tpu.vector_store %arg13[%c48, %c0_14], %29 {strides = array<i32>} : memref<288x256xbf16, #tpu.memory_space<vmem>>, vector<16x256xbf16>,
    %31 = arith.truncf %6 : vector<16x256xf32> to vector<16x256xbf16>
    %c64 = arith.constant 64 : index
    %c0_15 = arith.constant 0 : index
    %32 = vector.load %arg13[%c64, %c0_15] : memref<288x256xbf16, #tpu.memory_space<vmem>>, vector<16x256xbf16>
    tpu.vector_store %arg13[%c64, %c0_15], %31 {strides = array<i32>} : memref<288x256xbf16, #tpu.memory_space<vmem>>, vector<16x256xbf16>,
    %c255_i32 = arith.constant 255 : i32
    %33 = tpu.dynamic_rotate %6 by %c255_i32 dim 1 : vector<16x256xf32>, i32 -> vector<16x256xf32>
    %34 = vector.extract_strided_slice %0 {offsets = [5, 0], sizes = [1, 256], strides = [1, 1]} : vector<9x256xf32> to vector<1x256xf32>
    %35 = vector.broadcast %34 : vector<1x256xf32> to vector<16x256xf32>
    %36 = arith.mulf %33, %35 : vector<16x256xf32>
    %37 = arith.truncf %36 : vector<16x256xf32> to vector<16x256xbf16>
    %c80 = arith.constant 80 : index
    %c0_16 = arith.constant 0 : index
    %38 = vector.load %arg13[%c80, %c0_16] : memref<288x256xbf16, #tpu.memory_space<vmem>>, vector<16x256xbf16>
    tpu.vector_store %arg13[%c80, %c0_16], %37 {strides = array<i32>} : memref<288x256xbf16, #tpu.memory_space<vmem>>, vector<16x256xbf16>,
    %c241_i32 = arith.constant 241 : i32
    %39 = tpu.dynamic_rotate %6 by %c241_i32 dim 1 : vector<16x256xf32>, i32 -> vector<16x256xf32>
    %40 = vector.extract_strided_slice %0 {offsets = [6, 0], sizes = [1, 256], strides = [1, 1]} : vector<9x256xf32> to vector<1x256xf32>
    %41 = vector.broadcast %40 : vector<1x256xf32> to vector<16x256xf32>
    %42 = arith.mulf %39, %41 : vector<16x256xf32>
    %43 = arith.truncf %42 : vector<16x256xf32> to vector<16x256xbf16>
    %c96 = arith.constant 96 : index
    %c0_17 = arith.constant 0 : index
    %44 = vector.load %arg13[%c96, %c0_17] : memref<288x256xbf16, #tpu.memory_space<vmem>>, vector<16x256xbf16>
    tpu.vector_store %arg13[%c96, %c0_17], %43 {strides = array<i32>} : memref<288x256xbf16, #tpu.memory_space<vmem>>, vector<16x256xbf16>,
    %c240_i32 = arith.constant 240 : i32
    %45 = tpu.dynamic_rotate %6 by %c240_i32 dim 1 : vector<16x256xf32>, i32 -> vector<16x256xf32>
    %46 = vector.extract_strided_slice %0 {offsets = [7, 0], sizes = [1, 256], strides = [1, 1]} : vector<9x256xf32> to vector<1x256xf32>
    %47 = vector.broadcast %46 : vector<1x256xf32> to vector<16x256xf32>
    %48 = arith.mulf %45, %47 : vector<16x256xf32>
    %49 = arith.truncf %48 : vector<16x256xf32> to vector<16x256xbf16>
    %c112 = arith.constant 112 : index
    %c0_18 = arith.constant 0 : index
    %50 = vector.load %arg13[%c112, %c0_18] : memref<288x256xbf16, #tpu.memory_space<vmem>>, vector<16x256xbf16>
    tpu.vector_store %arg13[%c112, %c0_18], %49 {strides = array<i32>} : memref<288x256xbf16, #tpu.memory_space<vmem>>, vector<16x256xbf16>,
    %c239_i32 = arith.constant 239 : i32
    %51 = tpu.dynamic_rotate %6 by %c239_i32 dim 1 : vector<16x256xf32>, i32 -> vector<16x256xf32>
    %52 = vector.extract_strided_slice %0 {offsets = [8, 0], sizes = [1, 256], strides = [1, 1]} : vector<9x256xf32> to vector<1x256xf32>
    %53 = vector.broadcast %52 : vector<1x256xf32> to vector<16x256xf32>
    %54 = arith.mulf %51, %53 : vector<16x256xf32>
    %55 = arith.truncf %54 : vector<16x256xf32> to vector<16x256xbf16>
    %c128 = arith.constant 128 : index
    %c0_19 = arith.constant 0 : index
    %56 = vector.load %arg13[%c128, %c0_19] : memref<288x256xbf16, #tpu.memory_space<vmem>>, vector<16x256xbf16>
    tpu.vector_store %arg13[%c128, %c0_19], %55 {strides = array<i32>} : memref<288x256xbf16, #tpu.memory_space<vmem>>, vector<16x256xbf16>,
    %c0_20 = arith.constant 0 : index
    %c0_21 = arith.constant 0 : index
    %57 = vector.load %arg2[%c0_20, %c0_21] : memref<32x144xbf16, #tpu.memory_space<vmem>>, vector<32x144xbf16>
    %c0_22 = arith.constant 0 : index
    %c0_23 = arith.constant 0 : index
    %58 = vector.load %arg13[%c0_22, %c0_23] : memref<288x256xbf16, #tpu.memory_space<vmem>>, vector<144x256xbf16>
    %cst = arith.constant dense<0.000000e+00> : vector<32x256xf32>
    %59 = tpu.matmul %57, %58, %cst {dimension_numbers = #tpu.dot_dimension_numbers<[1], [0], [0], [1], [0, 0, 1, 1], [], []>} : vector<32x144xbf16>, vector<144x256xbf16>, vector<32x256xf32> -> vector<32x256xf32>
    %c0_24 = arith.constant 0 : index
    %c0_25 = arith.constant 0 : index
    %60 = vector.load %arg3[%c0_24, %c0_25] : memref<32x1xf32, #tpu.memory_space<vmem>>, vector<32x1xf32>
    %61 = vector.broadcast %60 : vector<32x1xf32> to vector<32x256xf32>
    %62 = arith.addf %59, %61 : vector<32x256xf32>
    %cst_26 = arith.constant 0.000000e+00 : f32
    %63 = vector.broadcast %cst_26 : f32 to vector<32x256xf32>
    %64 = arith.maximumf %62, %63 : vector<32x256xf32>
    %c255_i32_27 = arith.constant 255 : i32
    %65 = tpu.dynamic_rotate %64 by %c255_i32_27 dim 1 : vector<32x256xf32>, i32 -> vector<32x256xf32>
    %66 = arith.maximumf %64, %65 : vector<32x256xf32>
    %c240_i32_28 = arith.constant 240 : i32
    %67 = tpu.dynamic_rotate %66 by %c240_i32_28 dim 1 : vector<32x256xf32>, i32 -> vector<32x256xf32>
    %68 = arith.maximumf %66, %67 : vector<32x256xf32>
    %69 = arith.truncf %68 : vector<32x256xf32> to vector<32x256xbf16>
    %cst_29 = arith.constant dense<0.000000e+00> : vector<32x128xf32>
    %70 = tpu.matmul %69, %2, %cst_29 {dimension_numbers = #tpu.dot_dimension_numbers<[1], [0], [0], [1], [0, 0, 1, 1], [], []>} : vector<32x256xbf16>, vector<256x128xbf16>, vector<32x128xf32> -> vector<32x128xf32>
    %c9_i32 = arith.constant 9 : i32
    %71 = tpu.dynamic_rotate %70 by %c9_i32 dim 1 : vector<32x128xf32>, i32 -> vector<32x128xf32>
    %72 = vector.extract_strided_slice %1 {offsets = [0, 0], sizes = [1, 128], strides = [1, 1]} : vector<9x128xf32> to vector<1x128xf32>
    %73 = vector.broadcast %72 : vector<1x128xf32> to vector<32x128xf32>
    %74 = arith.mulf %71, %73 : vector<32x128xf32>
    %75 = arith.truncf %74 : vector<32x128xf32> to vector<32x128xbf16>
    %c0_30 = arith.constant 0 : index
    %c0_31 = arith.constant 0 : index
    %76 = vector.load %arg14[%c0_30, %c0_31] : memref<288x128xbf16, #tpu.memory_space<vmem>>, vector<32x128xbf16>
    tpu.vector_store %arg14[%c0_30, %c0_31], %75 {strides = array<i32>} : memref<288x128xbf16, #tpu.memory_space<vmem>>, vector<32x128xbf16>,
    %c8_i32 = arith.constant 8 : i32
    %77 = tpu.dynamic_rotate %70 by %c8_i32 dim 1 : vector<32x128xf32>, i32 -> vector<32x128xf32>
    %78 = vector.extract_strided_slice %1 {offsets = [1, 0], sizes = [1, 128], strides = [1, 1]} : vector<9x128xf32> to vector<1x128xf32>
    %79 = vector.broadcast %78 : vector<1x128xf32> to vector<32x128xf32>
    %80 = arith.mulf %77, %79 : vector<32x128xf32>
    %81 = arith.truncf %80 : vector<32x128xf32> to vector<32x128xbf16>
    %c32_32 = arith.constant 32 : index
    %c0_33 = arith.constant 0 : index
    %82 = vector.load %arg14[%c32_32, %c0_33] : memref<288x128xbf16, #tpu.memory_space<vmem>>, vector<32x128xbf16>
    tpu.vector_store %arg14[%c32_32, %c0_33], %81 {strides = array<i32>} : memref<288x128xbf16, #tpu.memory_space<vmem>>, vector<32x128xbf16>,
    %c7_i32 = arith.constant 7 : i32
    %83 = tpu.dynamic_rotate %70 by %c7_i32 dim 1 : vector<32x128xf32>, i32 -> vector<32x128xf32>
    %84 = vector.extract_strided_slice %1 {offsets = [2, 0], sizes = [1, 128], strides = [1, 1]} : vector<9x128xf32> to vector<1x128xf32>
    %85 = vector.broadcast %84 : vector<1x128xf32> to vector<32x128xf32>
    %86 = arith.mulf %83, %85 : vector<32x128xf32>
    %87 = arith.truncf %86 : vector<32x128xf32> to vector<32x128xbf16>
    %c64_34 = arith.constant 64 : index
    %c0_35 = arith.constant 0 : index
    %88 = vector.load %arg14[%c64_34, %c0_35] : memref<288x128xbf16, #tpu.memory_space<vmem>>, vector<32x128xbf16>
    tpu.vector_store %arg14[%c64_34, %c0_35], %87 {strides = array<i32>} : memref<288x128xbf16, #tpu.memory_space<vmem>>, vector<32x128xbf16>,
    %c1_i32_36 = arith.constant 1 : i32
    %89 = tpu.dynamic_rotate %70 by %c1_i32_36 dim 1 : vector<32x128xf32>, i32 -> vector<32x128xf32>
    %90 = vector.extract_strided_slice %1 {offsets = [3, 0], sizes = [1, 128], strides = [1, 1]} : vector<9x128xf32> to vector<1x128xf32>
    %91 = vector.broadcast %90 : vector<1x128xf32> to vector<32x128xf32>
    %92 = arith.mulf %89, %91 : vector<32x128xf32>
    %93 = arith.truncf %92 : vector<32x128xf32> to vector<32x128xbf16>
    %c96_37 = arith.constant 96 : index
    %c0_38 = arith.constant 0 : index
    %94 = vector.load %arg14[%c96_37, %c0_38] : memref<288x128xbf16, #tpu.memory_space<vmem>>, vector<32x128xbf16>
    tpu.vector_store %arg14[%c96_37, %c0_38], %93 {strides = array<i32>} : memref<288x128xbf16, #tpu.memory_space<vmem>>, vector<32x128xbf16>,
    %95 = arith.truncf %70 : vector<32x128xf32> to vector<32x128xbf16>
    %c128_39 = arith.constant 128 : index
    %c0_40 = arith.constant 0 : index
    %96 = vector.load %arg14[%c128_39, %c0_40] : memref<288x128xbf16, #tpu.memory_space<vmem>>, vector<32x128xbf16>
    tpu.vector_store %arg14[%c128_39, %c0_40], %95 {strides = array<i32>} : memref<288x128xbf16, #tpu.memory_space<vmem>>, vector<32x128xbf16>,
    %c127_i32 = arith.constant 127 : i32
    %97 = tpu.dynamic_rotate %70 by %c127_i32 dim 1 : vector<32x128xf32>, i32 -> vector<32x128xf32>
    %98 = vector.extract_strided_slice %1 {offsets = [5, 0], sizes = [1, 128], strides = [1, 1]} : vector<9x128xf32> to vector<1x128xf32>
    %99 = vector.broadcast %98 : vector<1x128xf32> to vector<32x128xf32>
    %100 = arith.mulf %97, %99 : vector<32x128xf32>
    %101 = arith.truncf %100 : vector<32x128xf32> to vector<32x128xbf16>
    %c160 = arith.constant 160 : index
    %c0_41 = arith.constant 0 : index
    %102 = vector.load %arg14[%c160, %c0_41] : memref<288x128xbf16, #tpu.memory_space<vmem>>, vector<32x128xbf16>
    tpu.vector_store %arg14[%c160, %c0_41], %101 {strides = array<i32>} : memref<288x128xbf16, #tpu.memory_space<vmem>>, vector<32x128xbf16>,
    %c121_i32 = arith.constant 121 : i32
    %103 = tpu.dynamic_rotate %70 by %c121_i32 dim 1 : vector<32x128xf32>, i32 -> vector<32x128xf32>
    %104 = vector.extract_strided_slice %1 {offsets = [6, 0], sizes = [1, 128], strides = [1, 1]} : vector<9x128xf32> to vector<1x128xf32>
    %105 = vector.broadcast %104 : vector<1x128xf32> to vector<32x128xf32>
    %106 = arith.mulf %103, %105 : vector<32x128xf32>
    %107 = arith.truncf %106 : vector<32x128xf32> to vector<32x128xbf16>
    %c192 = arith.constant 192 : index
    %c0_42 = arith.constant 0 : index
    %108 = vector.load %arg14[%c192, %c0_42] : memref<288x128xbf16, #tpu.memory_space<vmem>>, vector<32x128xbf16>
    tpu.vector_store %arg14[%c192, %c0_42], %107 {strides = array<i32>} : memref<288x128xbf16, #tpu.memory_space<vmem>>, vector<32x128xbf16>,
    %c120_i32 = arith.constant 120 : i32
    %109 = tpu.dynamic_rotate %70 by %c120_i32 dim 1 : vector<32x128xf32>, i32 -> vector<32x128xf32>
    %110 = vector.extract_strided_slice %1 {offsets = [7, 0], sizes = [1, 128], strides = [1, 1]} : vector<9x128xf32> to vector<1x128xf32>
    %111 = vector.broadcast %110 : vector<1x128xf32> to vector<32x128xf32>
    %112 = arith.mulf %109, %111 : vector<32x128xf32>
    %113 = arith.truncf %112 : vector<32x128xf32> to vector<32x128xbf16>
    %c224 = arith.constant 224 : index
    %c0_43 = arith.constant 0 : index
    %114 = vector.load %arg14[%c224, %c0_43] : memref<288x128xbf16, #tpu.memory_space<vmem>>, vector<32x128xbf16>
    tpu.vector_store %arg14[%c224, %c0_43], %113 {strides = array<i32>} : memref<288x128xbf16, #tpu.memory_space<vmem>>, vector<32x128xbf16>,
    %c119_i32 = arith.constant 119 : i32
    %115 = tpu.dynamic_rotate %70 by %c119_i32 dim 1 : vector<32x128xf32>, i32 -> vector<32x128xf32>
    %116 = vector.extract_strided_slice %1 {offsets = [8, 0], sizes = [1, 128], strides = [1, 1]} : vector<9x128xf32> to vector<1x128xf32>
    %117 = vector.broadcast %116 : vector<1x128xf32> to vector<32x128xf32>
    %118 = arith.mulf %115, %117 : vector<32x128xf32>
    %119 = arith.truncf %118 : vector<32x128xf32> to vector<32x128xbf16>
    %c256 = arith.constant 256 : index
    %c0_44 = arith.constant 0 : index
    %120 = vector.load %arg14[%c256, %c0_44] : memref<288x128xbf16, #tpu.memory_space<vmem>>, vector<32x128xbf16>
    tpu.vector_store %arg14[%c256, %c0_44], %119 {strides = array<i32>} : memref<288x128xbf16, #tpu.memory_space<vmem>>, vector<32x128xbf16>,
    %c0_45 = arith.constant 0 : index
    %c0_46 = arith.constant 0 : index
    %121 = vector.load %arg4[%c0_45, %c0_46] : memref<32x288xbf16, #tpu.memory_space<vmem>>, vector<32x288xbf16>
    %c0_47 = arith.constant 0 : index
    %c0_48 = arith.constant 0 : index
    %122 = vector.load %arg14[%c0_47, %c0_48] : memref<288x128xbf16, #tpu.memory_space<vmem>>, vector<288x128xbf16>
    %cst_49 = arith.constant dense<0.000000e+00> : vector<32x128xf32>
    %123 = tpu.matmul %121, %122, %cst_49 {dimension_numbers = #tpu.dot_dimension_numbers<[1], [0], [0], [1], [0, 0, 1, 1], [], []>} : vector<32x288xbf16>, vector<288x128xbf16>, vector<32x128xf32> -> vector<32x128xf32>
    %c0_50 = arith.constant 0 : index
    %c0_51 = arith.constant 0 : index
    %124 = vector.load %arg5[%c0_50, %c0_51] : memref<32x1xf32, #tpu.memory_space<vmem>>, vector<32x1xf32>
    %125 = vector.broadcast %124 : vector<32x1xf32> to vector<32x128xf32>
    %126 = arith.addf %123, %125 : vector<32x128xf32>
    %cst_52 = arith.constant 0.000000e+00 : f32
    %127 = vector.broadcast %cst_52 : f32 to vector<32x128xf32>
    %128 = arith.maximumf %126, %127 : vector<32x128xf32>
    %129 = arith.truncf %128 : vector<32x128xf32> to vector<32x128xbf16>
    %cst_53 = arith.constant dense<0.000000e+00> : vector<32x256xf32>
    %130 = tpu.matmul %129, %3, %cst_53 {dimension_numbers = #tpu.dot_dimension_numbers<[1], [0], [0], [1], [0, 0, 1, 1], [], []>} : vector<32x128xbf16>, vector<128x256xbf16>, vector<32x256xf32> -> vector<32x256xf32>
    %c17_i32_54 = arith.constant 17 : i32
    %131 = tpu.dynamic_rotate %130 by %c17_i32_54 dim 1 : vector<32x256xf32>, i32 -> vector<32x256xf32>
    %132 = vector.extract_strided_slice %0 {offsets = [0, 0], sizes = [1, 256], strides = [1, 1]} : vector<9x256xf32> to vector<1x256xf32>
    %133 = vector.broadcast %132 : vector<1x256xf32> to vector<32x256xf32>
    %134 = arith.mulf %131, %133 : vector<32x256xf32>
    %135 = arith.truncf %134 : vector<32x256xf32> to vector<32x256xbf16>
    %c0_55 = arith.constant 0 : index
    %c0_56 = arith.constant 0 : index
    %136 = vector.load %arg13[%c0_55, %c0_56] : memref<288x256xbf16, #tpu.memory_space<vmem>>, vector<32x256xbf16>
    tpu.vector_store %arg13[%c0_55, %c0_56], %135 {strides = array<i32>} : memref<288x256xbf16, #tpu.memory_space<vmem>>, vector<32x256xbf16>,
    %c16_i32_57 = arith.constant 16 : i32
    %137 = tpu.dynamic_rotate %130 by %c16_i32_57 dim 1 : vector<32x256xf32>, i32 -> vector<32x256xf32>
    %138 = vector.extract_strided_slice %0 {offsets = [1, 0], sizes = [1, 256], strides = [1, 1]} : vector<9x256xf32> to vector<1x256xf32>
    %139 = vector.broadcast %138 : vector<1x256xf32> to vector<32x256xf32>
    %140 = arith.mulf %137, %139 : vector<32x256xf32>
    %141 = arith.truncf %140 : vector<32x256xf32> to vector<32x256xbf16>
    %c32_58 = arith.constant 32 : index
    %c0_59 = arith.constant 0 : index
    %142 = vector.load %arg13[%c32_58, %c0_59] : memref<288x256xbf16, #tpu.memory_space<vmem>>, vector<32x256xbf16>
    tpu.vector_store %arg13[%c32_58, %c0_59], %141 {strides = array<i32>} : memref<288x256xbf16, #tpu.memory_space<vmem>>, vector<32x256xbf16>,
    %c15_i32_60 = arith.constant 15 : i32
    %143 = tpu.dynamic_rotate %130 by %c15_i32_60 dim 1 : vector<32x256xf32>, i32 -> vector<32x256xf32>
    %144 = vector.extract_strided_slice %0 {offsets = [2, 0], sizes = [1, 256], strides = [1, 1]} : vector<9x256xf32> to vector<1x256xf32>
    %145 = vector.broadcast %144 : vector<1x256xf32> to vector<32x256xf32>
    %146 = arith.mulf %143, %145 : vector<32x256xf32>
    %147 = arith.truncf %146 : vector<32x256xf32> to vector<32x256xbf16>
    %c64_61 = arith.constant 64 : index
    %c0_62 = arith.constant 0 : index
    %148 = vector.load %arg13[%c64_61, %c0_62] : memref<288x256xbf16, #tpu.memory_space<vmem>>, vector<32x256xbf16>
    tpu.vector_store %arg13[%c64_61, %c0_62], %147 {strides = array<i32>} : memref<288x256xbf16, #tpu.memory_space<vmem>>, vector<32x256xbf16>,
    %c1_i32_63 = arith.constant 1 : i32
    %149 = tpu.dynamic_rotate %130 by %c1_i32_63 dim 1 : vector<32x256xf32>, i32 -> vector<32x256xf32>
    %150 = vector.extract_strided_slice %0 {offsets = [3, 0], sizes = [1, 256], strides = [1, 1]} : vector<9x256xf32> to vector<1x256xf32>
    %151 = vector.broadcast %150 : vector<1x256xf32> to vector<32x256xf32>
    %152 = arith.mulf %149, %151 : vector<32x256xf32>
    %153 = arith.truncf %152 : vector<32x256xf32> to vector<32x256xbf16>
    %c96_64 = arith.constant 96 : index
    %c0_65 = arith.constant 0 : index
    %154 = vector.load %arg13[%c96_64, %c0_65] : memref<288x256xbf16, #tpu.memory_space<vmem>>, vector<32x256xbf16>
    tpu.vector_store %arg13[%c96_64, %c0_65], %153 {strides = array<i32>} : memref<288x256xbf16, #tpu.memory_space<vmem>>, vector<32x256xbf16>,
    %155 = arith.truncf %130 : vector<32x256xf32> to vector<32x256xbf16>
    %c128_66 = arith.constant 128 : index
    %c0_67 = arith.constant 0 : index
    %156 = vector.load %arg13[%c128_66, %c0_67] : memref<288x256xbf16, #tpu.memory_space<vmem>>, vector<32x256xbf16>
    tpu.vector_store %arg13[%c128_66, %c0_67], %155 {strides = array<i32>} : memref<288x256xbf16, #tpu.memory_space<vmem>>, vector<32x256xbf16>,
    %c255_i32_68 = arith.constant 255 : i32
    %157 = tpu.dynamic_rotate %130 by %c255_i32_68 dim 1 : vector<32x256xf32>, i32 -> vector<32x256xf32>
    %158 = vector.extract_strided_slice %0 {offsets = [5, 0], sizes = [1, 256], strides = [1, 1]} : vector<9x256xf32> to vector<1x256xf32>
    %159 = vector.broadcast %158 : vector<1x256xf32> to vector<32x256xf32>
    %160 = arith.mulf %157, %159 : vector<32x256xf32>
    %161 = arith.truncf %160 : vector<32x256xf32> to vector<32x256xbf16>
    %c160_69 = arith.constant 160 : index
    %c0_70 = arith.constant 0 : index
    %162 = vector.load %arg13[%c160_69, %c0_70] : memref<288x256xbf16, #tpu.memory_space<vmem>>, vector<32x256xbf16>
    tpu.vector_store %arg13[%c160_69, %c0_70], %161 {strides = array<i32>} : memref<288x256xbf16, #tpu.memory_space<vmem>>, vector<32x256xbf16>,
    %c241_i32_71 = arith.constant 241 : i32
    %163 = tpu.dynamic_rotate %130 by %c241_i32_71 dim 1 : vector<32x256xf32>, i32 -> vector<32x256xf32>
    %164 = vector.extract_strided_slice %0 {offsets = [6, 0], sizes = [1, 256], strides = [1, 1]} : vector<9x256xf32> to vector<1x256xf32>
    %165 = vector.broadcast %164 : vector<1x256xf32> to vector<32x256xf32>
    %166 = arith.mulf %163, %165 : vector<32x256xf32>
    %167 = arith.truncf %166 : vector<32x256xf32> to vector<32x256xbf16>
    %c192_72 = arith.constant 192 : index
    %c0_73 = arith.constant 0 : index
    %168 = vector.load %arg13[%c192_72, %c0_73] : memref<288x256xbf16, #tpu.memory_space<vmem>>, vector<32x256xbf16>
    tpu.vector_store %arg13[%c192_72, %c0_73], %167 {strides = array<i32>} : memref<288x256xbf16, #tpu.memory_space<vmem>>, vector<32x256xbf16>,
    %c240_i32_74 = arith.constant 240 : i32
    %169 = tpu.dynamic_rotate %130 by %c240_i32_74 dim 1 : vector<32x256xf32>, i32 -> vector<32x256xf32>
    %170 = vector.extract_strided_slice %0 {offsets = [7, 0], sizes = [1, 256], strides = [1, 1]} : vector<9x256xf32> to vector<1x256xf32>
    %171 = vector.broadcast %170 : vector<1x256xf32> to vector<32x256xf32>
    %172 = arith.mulf %169, %171 : vector<32x256xf32>
    %173 = arith.truncf %172 : vector<32x256xf32> to vector<32x256xbf16>
    %c224_75 = arith.constant 224 : index
    %c0_76 = arith.constant 0 : index
    %174 = vector.load %arg13[%c224_75, %c0_76] : memref<288x256xbf16, #tpu.memory_space<vmem>>, vector<32x256xbf16>
    tpu.vector_store %arg13[%c224_75, %c0_76], %173 {strides = array<i32>} : memref<288x256xbf16, #tpu.memory_space<vmem>>, vector<32x256xbf16>,
    %c239_i32_77 = arith.constant 239 : i32
    %175 = tpu.dynamic_rotate %130 by %c239_i32_77 dim 1 : vector<32x256xf32>, i32 -> vector<32x256xf32>
    %176 = vector.extract_strided_slice %0 {offsets = [8, 0], sizes = [1, 256], strides = [1, 1]} : vector<9x256xf32> to vector<1x256xf32>
    %177 = vector.broadcast %176 : vector<1x256xf32> to vector<32x256xf32>
    %178 = arith.mulf %175, %177 : vector<32x256xf32>
    %179 = arith.truncf %178 : vector<32x256xf32> to vector<32x256xbf16>
    %c256_78 = arith.constant 256 : index
    %c0_79 = arith.constant 0 : index
    %180 = vector.load %arg13[%c256_78, %c0_79] : memref<288x256xbf16, #tpu.memory_space<vmem>>, vector<32x256xbf16>
    tpu.vector_store %arg13[%c256_78, %c0_79], %179 {strides = array<i32>} : memref<288x256xbf16, #tpu.memory_space<vmem>>, vector<32x256xbf16>,
    %c0_80 = arith.constant 0 : index
    %c0_81 = arith.constant 0 : index
    %181 = vector.load %arg6[%c0_80, %c0_81] : memref<8x288xbf16, #tpu.memory_space<vmem>>, vector<8x288xbf16>
    %c0_82 = arith.constant 0 : index
    %c0_83 = arith.constant 0 : index
    %182 = vector.load %arg13[%c0_82, %c0_83] : memref<288x256xbf16, #tpu.memory_space<vmem>>, vector<288x256xbf16>
    %cst_84 = arith.constant dense<0.000000e+00> : vector<8x256xf32>
    %183 = tpu.matmul %181, %182, %cst_84 {dimension_numbers = #tpu.dot_dimension_numbers<[1], [0], [0], [1], [0, 0, 1, 1], [], []>} : vector<8x288xbf16>, vector<288x256xbf16>, vector<8x256xf32> -> vector<8x256xf32>
    %c0_85 = arith.constant 0 : index
    %c0_86 = arith.constant 0 : index
    %184 = vector.load %arg7[%c0_85, %c0_86] : memref<8x1xf32, #tpu.memory_space<vmem>>, vector<8x1xf32>
    %185 = vector.broadcast %184 : vector<8x1xf32> to vector<8x256xf32>
    %186 = arith.addf %183, %185 : vector<8x256xf32>
    %c0_87 = arith.constant 0 : index
    %c0_88 = arith.constant 0 : index
    %c0_89 = arith.constant 0 : index
    %187 = vector.load %arg12[%c0_87, %c0_88, %c0_89] : memref<1x8x256xf32, #tpu.memory_space<vmem>>, vector<1x8x256xf32>
    %188 = vector.shape_cast %187 : vector<1x8x256xf32> to vector<8x256xf32>
    %189 = vector.shape_cast %186 : vector<8x256xf32> to vector<1x8x256xf32>
    tpu.vector_store %arg12[%c0_87, %c0_88, %c0_89], %189 {strides = array<i32>} : memref<1x8x256xf32, #tpu.memory_space<vmem>>, vector<1x8x256xf32>,
    return
  }
  func.func @transform_0(%arg0: i32) -> (i32, i32, i32) {
    %c0_i32 = arith.constant 0 : i32
    %c0_i32_0 = arith.constant 0 : i32
    %c0_i32_1 = arith.constant 0 : i32
    return %arg0, %c0_i32, %c0_i32_0 : i32, i32, i32
  }
  func.func @transform_1(%arg0: i32) -> (i32, i32) {
    %c0_i32 = arith.constant 0 : i32
    %c0_i32_0 = arith.constant 0 : i32
    %c0_i32_1 = arith.constant 0 : i32
    return %c0_i32, %c0_i32_0 : i32, i32
  }
  func.func @transform_2(%arg0: i32) -> (i32, i32) {
    %c0_i32 = arith.constant 0 : i32
    %c0_i32_0 = arith.constant 0 : i32
    %c0_i32_1 = arith.constant 0 : i32
    return %c0_i32, %c0_i32_0 : i32, i32
  }
  func.func @transform_3(%arg0: i32) -> (i32, i32) {
    %c0_i32 = arith.constant 0 : i32
    %c0_i32_0 = arith.constant 0 : i32
    %c0_i32_1 = arith.constant 0 : i32
    return %c0_i32, %c0_i32_0 : i32, i32
  }
  func.func @transform_4(%arg0: i32) -> (i32, i32) {
    %c0_i32 = arith.constant 0 : i32
    %c0_i32_0 = arith.constant 0 : i32
    %c0_i32_1 = arith.constant 0 : i32
    return %c0_i32, %c0_i32_0 : i32, i32
  }
  func.func @transform_5(%arg0: i32) -> (i32, i32) {
    %c0_i32 = arith.constant 0 : i32
    %c0_i32_0 = arith.constant 0 : i32
    %c0_i32_1 = arith.constant 0 : i32
    return %c0_i32, %c0_i32_0 : i32, i32
  }
  func.func @transform_6(%arg0: i32) -> (i32, i32) {
    %c0_i32 = arith.constant 0 : i32
    %c0_i32_0 = arith.constant 0 : i32
    %c0_i32_1 = arith.constant 0 : i32
    return %c0_i32, %c0_i32_0 : i32, i32
  }
  func.func @transform_7(%arg0: i32) -> (i32, i32) {
    %c0_i32 = arith.constant 0 : i32
    %c0_i32_0 = arith.constant 0 : i32
    %c0_i32_1 = arith.constant 0 : i32
    return %c0_i32, %c0_i32_0 : i32, i32
  }
  func.func @transform_8(%arg0: i32) -> (i32, i32) {
    %c0_i32 = arith.constant 0 : i32
    %c0_i32_0 = arith.constant 0 : i32
    %c0_i32_1 = arith.constant 0 : i32
    return %c0_i32, %c0_i32_0 : i32, i32
  }
  func.func @transform_9(%arg0: i32) -> (i32, i32) {
    %c0_i32 = arith.constant 0 : i32
    %c0_i32_0 = arith.constant 0 : i32
    %c0_i32_1 = arith.constant 0 : i32
    return %c0_i32, %c0_i32_0 : i32, i32
  }
  func.func @transform_10(%arg0: i32) -> (i32, i32) {
    %c0_i32 = arith.constant 0 : i32
    %c0_i32_0 = arith.constant 0 : i32
    %c0_i32_1 = arith.constant 0 : i32
    return %c0_i32, %c0_i32_0 : i32, i32
  }
  func.func @transform_11(%arg0: i32) -> (i32, i32, i32) {
    %c0_i32 = arith.constant 0 : i32
    %c0_i32_0 = arith.constant 0 : i32
    %c0_i32_1 = arith.constant 0 : i32
    return %arg0, %c0_i32, %c0_i32_0 : i32, i32, i32
  }
}

</mosaic_0001>

<bundles_post_ra>
// kernel: coc_fgbg_layered_poolnet.1
= control target key start
LH: loop header
LB: loop body
LE: loop exit
PB: predicated region body
PF: predicated region fallthrough
CT: control target
= control target key end

     0   :  { %s2480_s17 = smov 0   ;;  %s3536_s0 = inlined_call_operand.vmem [shape: bf16[2,16,256], index: 0, kind: input, shape index: {}]   ;;  %s3537_s1 = inlined_call_operand.vmem [shape: bf16[32,144], index: 1, kind: input, shape index: {}]   ;;  %s3538_s2 = inlined_call_operand.vmem [shape: f32[32,1], index: 2, kind: input, shape index: {}]   ;;  %s3539_s3 = inlined_call_operand.vmem [shape: bf16[32,288], index: 3, kind: input, shape index: {}]   ;;  %s3540_s4 = inlined_call_operand.vmem [shape: f32[32,1], index: 4, kind: input, shape index: {}]   ;;  %s3541_s5 = inlined_call_operand.vmem [shape: bf16[8,288], index: 5, kind: input, shape index: {}]   ;;  %s3542_s6 = inlined_call_operand.vmem [shape: f32[8,1], index: 6, kind: input, shape index: {}]   ;;  %s3543_s7 = inlined_call_operand.vmem [shape: f32[9,256], index: 7, kind: input, shape index: {}]   ;;  %s3544_s8 = inlined_call_operand.vmem [shape: f32[9,128], index: 8, kind: input, shape index: {}]   ;;  %s3545_s9 = inlined_call_operand.vmem [shape: bf16[256,128], index: 9, kind: input, shape index: {}]   ;;  %s3546_s10 = inlined_call_operand.vmem [shape: bf16[128,256], index: 10, kind: input, shape index: {}]   ;;  %s3547_s11 = inlined_call_operand.vmem [shape: f32[2,8,256], index: 11, kind: output, shape index: {}]  }
   0x1 LB: > { %s2051_s18 = sadd.s32 4294967295, %s2403_s17   ;;  %p2055_p0 = scmp.ge.s32.totalorder %s2403_s17, 1  ;;  %s2403_s17 = sphi %s2480_s17, %s21_s17  }
   0x2   : > { %p337_p1 = scmp.lt.s32.totalorder %s2403_s17, 3 }
   0x4   : > { %p338_p2 = pnand %p2055_p0, %p337_p1 }
   0x5   : > { %p377_p3 = scmp.lt.s32.totalorder (!%p338_p2), %s2051_s18, 1  ;;  %s2405_s23 = smov (!%p338_p2), 16   ;;  %v2340_v10 = vld [vmem:[%s3537_s1 + $0x4] ss:$8 sps:$4 sm:$0xff] (!%p338_p2)   ;;  %vm758_vm0 = vcmask (!%p338_p2), 130048   ;;  %v2413_v13 = vmov (!%p338_p2), 0   ;;  %v456_v16 = vlaneseq (!%p338_p2) }
   0x6   : > { %341 = sbr.rel (%p338_p2) target bundleno = 1955 (0x7a3), region = 64  ;;  %s2406_s24 = smov (!%p338_p2), 17   ;;  %2068 = vmatprep.mubr.msk.bf16.mxu0 (!%p338_p2), %vm758_vm0, %v2340_v10  ;;  %v717_v11 = vld [vmem:[%s3538_s2 + $0x8] sm:$0xff] (!%p338_p2)  ;;  %v716_v12 = vld [vmem:[%s3538_s2] sm:$0xff] (!%p338_p2)  ;;  %2295 = vset.pattern.permute.xlu1 (!%p338_p2), %v2413_v13  ;;  %v718_v14 = vld [vmem:[%s3538_s2 + $0x10] sm:$0xff] (!%p338_p2)  ;;  %vm1283_vm9 = vcmask (!%p338_p2), 261120  }
   0x7   : > { %s2407_s25 = smov (!%p338_p2), 15   ;;  %s2408_s26 = smov (!%p338_p2), 1   ;;  %2294 = vset.pattern.permute.xlu0 (!%p338_p2), %v2413_v13  ;;  %v719_v15 = vld [vmem:[%s3538_s2 + $0x18] sm:$0xff] (!%p338_p2)  ;;  %v464_v17 = vshrl.u32 (!%p338_p2), %v456_v16, 7  ;;  %v2542_v18 = vand.u32 (!%p338_p2), 127, %v456_v16  ;;  %v2549_v20 = vld [vmem:[%s3543_s7 + $0x8] sm:$0xff] (!%p338_p2) }
   0x8   : > { %s2409_s27 = smov (!%p338_p2), 127   ;;  %s2410_s28 = smov (!%p338_p2), 113   ;;  %v2556_v22 = vld [vmem:[%s3543_s7] sm:$0xff] (!%p338_p2) }
   0x9   : > { %s2411_s29 = smov (!%p338_p2), 112   ;;  %s3549_s30 = smov (!%p338_p2), 111   ;;  %v2544_v19 = vsub.s32 (!%p338_p2), 0, %v464_v17  ;;  %v2551_v21 = vsub.s32 (!%p338_p2), 1, %v464_v17  ;;  %v2558_v23 = vsub.s32 (!%p338_p2), 2, %v464_v17  ;;  %v2560_v24 = vsub.s32 (!%p338_p2), 3, %v464_v17 }
   0xa   : > { %v2562_v27 = vsub.s32 (!%p338_p2), 5, %v464_v17  ;;  %vm458_vm1 = vcmp.lt.s32.totalorder (!%p338_p2), %v2542_v18, 17  ;;  %vm487_vm2 = vcmp.lt.s32.totalorder (!%p338_p2), %v2542_v18, 16  ;;  %vm516_vm3 = vcmp.lt.s32.totalorder (!%p338_p2), %v2542_v18, 15  ;;  %s2414_s16 = smov (!%p338_p2), 9   ;;  %s2415_s20 = smov (!%p338_p2), 8  }
   0xb   : > { %v2567_v28 = vrot.slane (!%p338_p2), %v2549_v20, %v2544_v19  ;;  %v2572_v29 = vrot.slane (!%p338_p2), %v2556_v22, %v2544_v19  ;;  %v2576_v30 = vrot.slane (!%p338_p2), %v2549_v20, %v2551_v21  ;;  %v2580_v31 = vrot.slane (!%p338_p2), %v2556_v22, %v2551_v21  ;;  %s2416_s21 = smov (!%p338_p2), 121   ;;  %s2418_s12 = smov (!%p338_p2), 120  }
   0xc   : > { %v2585_v32 = vrot.slane (!%p338_p2), %v2549_v20, %v2558_v23  ;;  %v2589_v33 = vrot.slane (!%p338_p2), %v2556_v22, %v2558_v23  ;;  %v2593_v34 = vrot.slane (!%p338_p2), %v2549_v20, %v2560_v24  ;;  %v2597_v35 = vrot.slane (!%p338_p2), %v2556_v22, %v2560_v24 }
   0xd   : > { %s3565_s18 = smov (!%p377_p3, %s2051_s18), 1  ;;  %vm545_vm4 = vcmp.lt.s32.totalorder %v2542_v18, 1  ;;  %v2602_v38 = vrot.slane %v2549_v20, %v2562_v27  ;;  %v2606_v39 = vrot.slane %v2556_v22, %v2562_v27  ;;  %v2608_v40 = vsub.s32 6, %v464_v17 }
   0xe   : > { %s3548_s19 = sshll.u32 %s3565_s18, 4  ;;  %v2610_v41 = vsub.s32 7, %v464_v17  ;;  %vm586_vm5 = vcmp.lt.s32.totalorder %v2542_v18, 127  ;;  %vm644_vm6 = vcmp.lt.s32.totalorder %v2542_v18, 112  ;;  %vm615_vm7 = vcmp.lt.s32.totalorder %v2542_v18, 113 }
   0xf   : > { %s381_s22 = scalar_lea.vmem %s3536_s0, %s3548_s19  ;;  %vm673_vm8 = vcmp.lt.s32.totalorder %v2542_v18, 111  ;;  %v2394_v18 = vld [vmem:[%s3541_s5 + $0x8] ss:$0 sps:$4 sm:$0xff]   ;;  %s3563_s19 = sshll.u32 %s3565_s18, 4 }
  0x10   : > { %v2496_v0 = vld [vmem:[%s381_s22] sm:$0xff]  ;;  %v2498_v1 = vld [vmem:[%s381_s22 + $0x8] sm:$0xff]  ;;  %s2417_s22 = smov 7   ;;  %s386_s15 = scalar_lea.vmem %s3547_s11, %s3563_s19 }
  0x11   : > { %v444_v2 = vunpack.c.l.bf16 %v2496_v0  ;;  %v446_v3 = vunpack.c.l.bf16 %v2498_v1  ;;  %v445_v4 = vunpack.c.h.bf16 %v2496_v0  ;;  %v447_v5 = vunpack.c.h.bf16 %v2498_v1 }
  0x12   : > { %v2061_v8 = vcombine.high %v2496_v0, %v2498_v1  ;;  %v2060_v9 = vcombine.low %v2496_v0, %v2498_v1 }
  0x13   : > { %v2224_v6 = vpack.i.bf16 %v446_v3, %v444_v2  ;;  %v2229_v7 = vpack.i.bf16 %v447_v5, %v445_v4 }
  0x15   : > { %2225 = vrot.lane.b32.xlu1 %v2224_v6, %s2405_s23  ;;  %2215 = vrot.lane.b32.xlu0 %v2224_v6, %s2406_s24 }
  0x19   : > { %2230 = vrot.lane.b32.xlu1 %v2229_v7, %s2405_s23  ;;  %2220 = vrot.lane.b32.xlu0 %v2229_v7, %s2406_s24 }
  0x1d   : > { %2240 = vrot.lane.b32.xlu1 %v2229_v7, %s2407_s25  ;;  %2235 = vrot.lane.b32.xlu0 %v2224_v6, %s2407_s25 }
  0x21   : > { %2250 = vrot.lane.b32.xlu1 %v2229_v7, %s2408_s26  ;;  %2245 = vrot.lane.b32.xlu0 %v2224_v6, %s2408_s26 }
  0x25   : > { %2260 = vrot.lane.b32.xlu1 %v2229_v7, %s2409_s27  ;;  %2255 = vrot.lane.b32.xlu0 %v2224_v6, %s2409_s27 }
  0x29   : > { %2270 = vrot.lane.b32.xlu1 %v2229_v7, %s2410_s28  ;;  %2265 = vrot.lane.b32.xlu0 %v2224_v6, %s2410_s28 }
  0x2d   : > { %2280 = vrot.lane.b32.xlu1 %v2229_v7, %s2411_s29  ;;  %2275 = vrot.lane.b32.xlu0 %v2224_v6, %s2411_s29 }
  0x31   : > { %2290 = vrot.lane.b32.xlu1 %v2229_v7, %s3549_s30  ;;  %2285 = vrot.lane.b32.xlu0 %v2224_v6, %s3549_s30  ;;  %s2419_s30 = smov 119  }
  0x35   : > { %727 = vperm.xlu1 %2295, %v717_v11   ;;  %722 = vperm.xlu0 %2294, %v716_v12  }
  0x39   : > { %732 = vperm.xlu1 %2295, %v718_v14   ;;  %737 = vperm.xlu0 %2294, %v719_v15  }
  0x87   : > { %v2226_v25 = vpop.permute.xlu1 %2225  ;;  %v2216_v26 = vpop.permute.xlu0 %2215 }
  0x88   : > { %v2218_v42 = vunpack.i.h.bf16 %v2216_v26  ;;  %v2217_v43 = vunpack.i.l.bf16 %v2216_v26  ;;  %v2228_v46 = vunpack.i.h.bf16 %v2226_v25  ;;  %v2227_v47 = vunpack.i.l.bf16 %v2226_v25 }
  0x8b   : > { %v2231_v36 = vpop.permute.xlu1 %2230  ;;  %v2221_v37 = vpop.permute.xlu0 %2220 }
  0x8c   : > { %v2223_v44 = vunpack.i.h.bf16 %v2221_v37  ;;  %v2222_v45 = vunpack.i.l.bf16 %v2221_v37  ;;  %v2233_v48 = vunpack.i.h.bf16 %v2231_v36  ;;  %v2232_v49 = vunpack.i.l.bf16 %v2231_v36 }
  0x8e   : > { %v459_v50 = vsel %vm458_vm1, %v2217_v43, %v2222_v45  ;;  %v460_v51 = vsel %vm458_vm1, %v2218_v42, %v2223_v44  ;;  %v461_v52 = vsel %vm458_vm1, %v2222_v45, %v2217_v43  ;;  %v462_v53 = vsel %vm458_vm1, %v2223_v44, %v2218_v42 }
  0x8f   : > { %v2241_v54 = vpop.permute.xlu1 %2240  ;;  %v2236_v55 = vpop.permute.xlu0 %2235  ;;  %v472_v56 = vmul.f32 %v2567_v28, %v459_v50  ;;  %v474_v57 = vmul.f32 %v2567_v28, %v460_v51  ;;  %v471_v58 = vmul.f32 %v2572_v29, %v461_v52  ;;  %v473_v59 = vmul.f32 %v2572_v29, %v462_v53 }
  0x90   : > { %v2243_v60 = vunpack.i.h.bf16 %v2241_v54  ;;  %v2242_v61 = vunpack.i.l.bf16 %v2241_v54  ;;  %v2238_v62 = vunpack.i.h.bf16 %v2236_v55  ;;  %v2237_v63 = vunpack.i.l.bf16 %v2236_v55 }
  0x91   : > { %v476_v2 = vpack.c.bf16 %v474_v57, %v472_v56  ;;  %v475_v3 = vpack.c.bf16 %v473_v59, %v471_v58  ;;  %v488_v4 = vsel %vm487_vm2, %v2227_v47, %v2232_v49  ;;  %v489_v5 = vsel %vm487_vm2, %v2228_v46, %v2233_v48 }
  0x92   : > { %v501_v6 = vmul.f32 %v2576_v30, %v488_v4  ;;  %v503_v7 = vmul.f32 %v2576_v30, %v489_v5  ;;  %v490_v10 = vsel %vm487_vm2, %v2232_v49, %v2227_v47  ;;  %v491_v11 = vsel %vm487_vm2, %v2233_v48, %v2228_v46 }
  0x93   : > { %765 = vmatprep.subr.bf16.mxu0 %v476_v2  ;;  %v2251_v12 = vpop.permute.xlu1 %2250  ;;  %v2246_v14 = vpop.permute.xlu0 %2245  ;;  %v500_v15 = vmul.f32 %v2580_v31, %v490_v10  ;;  %v502_v16 = vmul.f32 %v2580_v31, %v491_v11  ;;  %v517_v17 = vsel %vm516_vm3, %v2237_v63, %v2242_v61  ;;  %v518_v25 = vsel %vm516_vm3, %v2238_v62, %v2243_v60 }
  0x94   : > { %766 = vmatpush1.bf16.msra.mxu0 %v475_v3  ;;  %v505_v26 = vpack.c.bf16 %v503_v7, %v501_v6  ;;  %v2253_v36 = vunpack.i.h.bf16 %v2251_v12  ;;  %v2252_v37 = vunpack.i.l.bf16 %v2251_v12  ;;  %v2248_v42 = vunpack.i.h.bf16 %v2246_v14 }
  0x95   : > { %v2247_v43 = vunpack.i.l.bf16 %v2246_v14  ;;  %v504_v44 = vpack.c.bf16 %v502_v16, %v500_v15  ;;  %v530_v45 = vmul.f32 %v2585_v32, %v517_v17  ;;  %v532_v46 = vmul.f32 %v2585_v32, %v518_v25 }
  0x96   : > { %767 = vmatprep.subr.bf16.mxu0 %v505_v26  ;;  %v519_v47 = vsel %vm516_vm3, %v2242_v61, %v2237_v63  ;;  %v520_v48 = vsel %vm516_vm3, %v2243_v60, %v2238_v62  ;;  %v547_v49 = vsel %vm545_vm4, %v2248_v42, %v2253_v36  ;;  %v549_v50 = vsel %vm545_vm4, %v2253_v36, %v2248_v42 }
  0x97   : > { %v534_v51 = vpack.c.bf16 %v532_v46, %v530_v45  ;;  %v529_v52 = vmul.f32 %v2589_v33, %v519_v47  ;;  %v531_v53 = vmul.f32 %v2589_v33, %v520_v48  ;;  %v2261_v54 = vpop.permute.xlu1 %2260  ;;  %v2256_v55 = vpop.permute.xlu0 %2255  ;;  %v546_v56 = vsel %vm545_vm4, %v2247_v43, %v2252_v37 }
  0x98   : > { %768 = vmatpush1.bf16.msra.mxu0 %v504_v44  ;;  %v2263_v57 = vunpack.i.h.bf16 %v2261_v54  ;;  %v2262_v58 = vunpack.i.l.bf16 %v2261_v54  ;;  %v2258_v59 = vunpack.i.h.bf16 %v2256_v55  ;;  %v2257_v60 = vunpack.i.l.bf16 %v2256_v55 }
  0x99   : > { %769 = vmatprep.subr.bf16.mxu0 %v534_v51  ;;  %v533_v61 = vpack.c.bf16 %v531_v53, %v529_v52  ;;  %v559_v62 = vmul.f32 %v2593_v34, %v546_v56  ;;  %v561_v63 = vmul.f32 %v2593_v34, %v547_v49  ;;  %v548_v2 = vsel %vm545_vm4, %v2252_v37, %v2247_v43 }
  0x9a   : > { %v558_v3 = vmul.f32 %v2597_v35, %v548_v2  ;;  %v560_v4 = vmul.f32 %v2597_v35, %v549_v50  ;;  %v589_v5 = vsel %vm586_vm5, %v2262_v58, %v2257_v60  ;;  %v590_v6 = vsel %vm586_vm5, %v2263_v57, %v2258_v59 }
  0x9b   : > { %v563_v7 = vpack.c.bf16 %v561_v63, %v559_v62  ;;  %v2271_v10 = vpop.permute.xlu1 %2270  ;;  %v2266_v11 = vpop.permute.xlu0 %2265  ;;  %v587_v12 = vsel %vm586_vm5, %v2257_v60, %v2262_v58  ;;  %v2671_v14 = vrot.slane %v2549_v20, %v2608_v40  ;;  %v600_v36 = vmul.f32 %v2602_v38, %v589_v5 }
  0x9c   : > { %770 = vmatpush1.bf16.msra.mxu0 %v533_v61  ;;  %v562_v15 = vpack.c.bf16 %v560_v4, %v558_v3  ;;  %v2273_v16 = vunpack.i.h.bf16 %v2271_v10  ;;  %v2272_v17 = vunpack.i.l.bf16 %v2271_v10  ;;  %v2268_v25 = vunpack.i.h.bf16 %v2266_v11 }
  0x9d   : > { %771 = vmatprep.subr.bf16.mxu0 %v563_v7  ;;  %v2267_v26 = vunpack.i.l.bf16 %v2266_v11  ;;  %v602_v37 = vmul.f32 %v2602_v38, %v590_v6  ;;  %v588_v42 = vsel %vm586_vm5, %v2258_v59, %v2263_v57  ;;  %v599_v43 = vmul.f32 %v2606_v39, %v587_v12 }
  0x9e   : > { %v619_v44 = vsel %vm615_vm7, %v2273_v16, %v2268_v25  ;;  %v2682_v45 = vrot.slane %v2556_v22, %v2608_v40  ;;  %v2686_v46 = vrot.slane %v2549_v20, %v2610_v41  ;;  %v601_v49 = vmul.f32 %v2606_v39, %v588_v42  ;;  %v2062_v42 = vld [vmem:[%s3543_s7 + $0x10] ss:$0 sm:$0xff] }
  0x9f   : > { %v2281_v47 = vpop.permute.xlu1 %2280  ;;  %v2276_v48 = vpop.permute.xlu0 %2275  ;;  %v618_v50 = vsel %vm615_vm7, %v2272_v17, %v2267_v26  ;;  %v616_v51 = vsel %vm615_vm7, %v2267_v26, %v2272_v17  ;;  %v617_v52 = vsel %vm615_vm7, %v2268_v25, %v2273_v16  ;;  %v604_v20 = vpack.c.bf16 %v602_v37, %v600_v36  ;;  %v2063_v16 = vld [vmem:[%s3543_s7 + $0x18] ss:$0 sm:$0xff] }
  0xa0   : > { %772 = vmatpush1.bf16.msra.mxu0 %v562_v15  ;;  %v2283_v53 = vunpack.i.h.bf16 %v2281_v47  ;;  %v2282_v54 = vunpack.i.l.bf16 %v2281_v47  ;;  %v2278_v55 = vunpack.i.h.bf16 %v2276_v48  ;;  %v2277_v56 = vunpack.i.l.bf16 %v2276_v48 }
  0xa1   : > { %773 = vmatprep.subr.bf16.mxu0 %v2061_v8  ;;  %v629_v57 = vmul.f32 %v2671_v14, %v618_v50  ;;  %v631_v58 = vmul.f32 %v2671_v14, %v619_v44  ;;  %v2702_v59 = vrot.slane %v2556_v22, %v2610_v41  ;;  %v630_v60 = vmul.f32 %v2682_v45, %v617_v52  ;;  %v2338_v52 = vld [vmem:[%s3537_s1] ss:$8 sps:$4 sm:$0xff]  }
  0xa2   : > { %v647_v61 = vsel %vm644_vm6, %v2282_v54, %v2277_v56  ;;  %v648_v62 = vsel %vm644_vm6, %v2283_v53, %v2278_v55  ;;  %v603_v8 = vpack.c.bf16 %v601_v49, %v599_v43  ;;  %v628_v3 = vmul.f32 %v2682_v45, %v616_v51 }
  0xa3   : > { %v2291_v63 = vpop.permute.xlu1 %2290  ;;  %v2286_v2 = vpop.permute.xlu0 %2285  ;;  %v658_v4 = vmul.f32 %v2686_v46, %v647_v61  ;;  %v660_v22 = vmul.f32 %v2686_v46, %v648_v62  ;;  %v633_v11 = vpack.c.bf16 %v631_v58, %v629_v57  ;;  %v645_v12 = vsel %vm644_vm6, %v2277_v56, %v2282_v54  ;;  %v2343_v54 = vld [vmem:[%s3537_s1 + $0x10] ss:$8 sps:$4 sm:$0xff]  }
  0xa4   : > { %774 = vmatpush1.bf16.msra.mxu0 %v2060_v9  ;;  %v2293_v5 = vunpack.i.h.bf16 %v2291_v63  ;;  %v2292_v6 = vunpack.i.l.bf16 %v2291_v63  ;;  %v2288_v7 = vunpack.i.h.bf16 %v2286_v2  ;;  %v2287_v10 = vunpack.i.l.bf16 %v2286_v2 }
  0xa5   : > { %775 = vmatprep.subr.bf16.mxu0 %v604_v20  ;;  %v646_v15 = vsel %vm644_vm6, %v2278_v55, %v2283_v53  ;;  %v632_v9 = vpack.c.bf16 %v630_v60, %v628_v3  ;;  %v662_v17 = vpack.c.bf16 %v660_v22, %v658_v4  ;;  %v657_v25 = vmul.f32 %v2702_v59, %v645_v12  ;;  %v2341_v53 = vld [vmem:[%s3537_s1 + $0x14] ss:$8 sps:$4 sm:$0xff]  }
  0xa6   : > { %v676_v0 = vsel %vm673_vm8, %v2292_v6, %v2287_v10  ;;  %v677_v1 = vsel %vm673_vm8, %v2293_v5, %v2288_v7  ;;  %v659_v26 = vmul.f32 %v2702_v59, %v646_v15  ;;  %v674_v43 = vsel %vm673_vm8, %v2287_v10, %v2292_v6 }
  0xa7   : > { %v687_v36 = vmul.f32 %v2063_v16, %v676_v0  ;;  %v689_v37 = vmul.f32 %v2063_v16, %v677_v1  ;;  %v675_v44 = vsel %vm673_vm8, %v2288_v7, %v2293_v5  ;;  %v686_v48 = vmul.f32 %v2062_v42, %v674_v43 }
  0xa8   : > { %776 = vmatpush1.bf16.msra.mxu0 %v603_v8  ;;  %v661_v47 = vpack.c.bf16 %v659_v26, %v657_v25  ;;  %v688_v49 = vmul.f32 %v2062_v42, %v675_v44  ;;  %v2344_v25 = vld [vmem:[%s3545_s9 + $0x40] sm:$0xff]  }
  0xa9   : > { %777 = vmatprep.subr.bf16.mxu0 %v633_v11  ;;  %v691_v50 = vpack.c.bf16 %v689_v37, %v687_v36  ;;  %v2345_v26 = vld [vmem:[%s3545_s9] sm:$0xff]   ;;  %v2346_v36 = vld [vmem:[%s3545_s9 + $0x48] sm:$0xff]  }
  0xaa   : > { %v690_v51 = vpack.c.bf16 %v688_v49, %v686_v48  ;;  %v2347_v48 = vld [vmem:[%s3545_s9 + $0x8] sm:$0xff]  }
  0xac   : > { %778 = vmatpush1.bf16.msra.mxu0 %v632_v9 }
  0xad   : > { %779 = vmatprep.subr.bf16.mxu0 %v662_v17 }
  0xb0   : > { %780 = vmatpush1.bf16.msra.mxu0 %v661_v47 }
  0xb1   : > { %781 = vmatprep.subr.bf16.mxu0 %v691_v50  ;;  %v2348_v50 = vld [vmem:[%s3545_s9 + $0x50] sm:$0xff]  }
  0xb4   : > { %782 = vmatpush1.bf16.msra.mxu0 %v690_v51  ;;  %v723_v55 = vpop.permute.xlu0 %722  ;;  %v728_v58 = vpop.permute.xlu1 %727  ;;  %v2349_v51 = vld [vmem:[%s3545_s9 + $0x10] sm:$0xff]  }
  0xb5   : > { %2119 = vmatprep.subr.bf16.mxu0 %v2344_v25 }
  0xb7   : > { %798 = vmatmul.mubr.bf16.vlgmr.msra.gmra.mrb[0].mxu0 %v2338_v52  ;;  %v2350_v52 = vld [vmem:[%s3545_s9 + $0x58] sm:$0xff]  }
  0xb8   : > { %2069 = vmatprep.mubr.msk.bf16.mxu0 %vm758_vm0, %v2341_v53  ;;  %v733_v6 = vpop.permute.xlu1 %732  ;;  %v738_v15 = vpop.permute.xlu0 %737  ;;  %2120 = vmatpush3.bf16.msra.mxu0 %v2345_v26  ;;  %v2351_v53 = vld [vmem:[%s3545_s9 + $0x18] sm:$0xff]  }
  0xb9   : > { %2121 = vmatprep.subr.bf16.mxu0 %v2346_v36 }
  0xbc   : > { %2122 = vmatpush3.bf16.msra.mxu0 %v2347_v48 }
  0xbd   : > { %2123 = vmatprep.subr.bf16.mxu0 %v2348_v50 }
  0xbf   : > { %808 = vmatmul.mubr.bf16.gmra.mrb[4].mxu0 %v2343_v54  ;;  %v2352_v54 = vld [vmem:[%s3545_s9 + $0x60] sm:$0xff]  }
  0xc0   : > { %2124 = vmatpush3.bf16.msra.mxu0 %v2349_v51 }
  0xc1   : > { %2125 = vmatprep.subr.bf16.mxu0 %v2350_v52 }
  0xc4   : > { %2126 = vmatpush3.bf16.msra.mxu0 %v2351_v53 }
  0xc5   : > { %2127 = vmatprep.subr.bf16.mxu0 %v2352_v54 }
 0x18a   : > { %v799_v56 = vpop.f32.mrb[0].mxu0 }
 0x18b   : > { %v2746_v20 = vadd.f32 %v799_v56, %v723_v55  ;;  %v801_v57 = vpop.f32.mrb[1].mxu0  ;;  %v2354_v56 = vld [vmem:[%s3545_s9 + $0x68] sm:$0xff]  }
 0x18c   : > { %v2748_v60 = vadd.f32 %v801_v57, %v723_v55  ;;  %v803_v61 = vpop.f32.mrb[2].mxu0  ;;  %v2353_v55 = vld [vmem:[%s3545_s9 + $0x20] sm:$0xff]   ;;  %v2355_v57 = vld [vmem:[%s3545_s9 + $0x28] sm:$0xff]  }
 0x18d   : > { %v2750_v62 = vadd.f32 %v803_v61, %v728_v58  ;;  %v805_v8 = vpop.f32.mrb[3].mxu0  ;;  %v818_v2 = vmax.f32 %v2746_v20, 0.0  ;;  %2128 = vmatpush3.bf16.msra.mxu0 %v2353_v55  ;;  %v2357_v61 = vld [vmem:[%s3545_s9 + $0x30] sm:$0xff]  }
 0x18e   : > { %v2752_v63 = vadd.f32 %v805_v8, %v728_v58  ;;  %v819_v4 = vmax.f32 %v2748_v60, 0.0  ;;  %2129 = vmatprep.subr.bf16.mxu0 %v2354_v56  ;;  %v2356_v58 = vld [vmem:[%s3545_s9 + $0x70] sm:$0xff]  }
 0x18f   : > { %v820_v3 = vmax.f32 %v2750_v62, 0.0 }
 0x190   : > { %v821_v22 = vmax.f32 %v2752_v63, 0.0 }
 0x191   : > { %v2296_v5 = vpack.i.bf16 %v820_v3, %v818_v2  ;;  %2130 = vmatpush3.bf16.msra.mxu0 %v2355_v57 }
 0x192   : > { %v2301_v7 = vpack.i.bf16 %v821_v22, %v819_v4  ;;  %v809_v10 = vpop.f32.mrb[4].mxu0  ;;  %2131 = vmatprep.subr.bf16.mxu0 %v2356_v58 }
 0x193   : > { %v2766_v11 = vadd.f32 %v809_v10, %v733_v6  ;;  %v811_v12 = vpop.f32.mrb[5].mxu0  ;;  %2297 = vrot.lane.b32.xlu1 %v2296_v5, %s2409_s27  ;;  %v2358_v10 = vld [vmem:[%s3545_s9 + $0x78] sm:$0xff]  }
 0x194   : > { %v2769_v16 = vadd.f32 %v811_v12, %v733_v6  ;;  %v813_v0 = vpop.f32.mrb[6].mxu0  ;;  %2302 = vrot.lane.b32.xlu0 %v2301_v7, %s2409_s27  ;;  %v2359_v12 = vld [vmem:[%s3545_s9 + $0x38] sm:$0xff]  }
 0x195   : > { %v2772_v1 = vadd.f32 %v813_v0, %v738_v15  ;;  %v815_v9 = vpop.f32.mrb[7].mxu0  ;;  %v822_v37 = vmax.f32 %v2766_v11, 0.0  ;;  %2132 = vmatpush3.bf16.msra.mxu0 %v2357_v61 }
 0x196   : > { %v2774_v17 = vadd.f32 %v815_v9, %v738_v15  ;;  %v823_v43 = vmax.f32 %v2769_v16, 0.0  ;;  %2133 = vmatprep.subr.bf16.mxu0 %v2358_v10 }
 0x197   : > { %v824_v42 = vmax.f32 %v2772_v1, 0.0 }
 0x198   : > { %v825_v44 = vmax.f32 %v2774_v17, 0.0 }
 0x199   : > { %v2306_v47 = vpack.i.bf16 %v824_v42, %v822_v37  ;;  %2134 = vmatpush3.bf16.msra.mxu0 %v2359_v12 }
 0x19a   : > { %v2311_v49 = vpack.i.bf16 %v825_v44, %v823_v43 }
 0x19b   : > { %2307 = vrot.lane.b32.xlu1 %v2306_v47, %s2409_s27 }
 0x19c   : > { %2312 = vrot.lane.b32.xlu0 %v2311_v49, %s2409_s27 }
 0x205   : > { %v2298_v8 = vpop.permute.xlu1 %2297 }
 0x206   : > { %v2300_v5 = vunpack.i.h.bf16 %v2298_v8  ;;  %v2299_v6 = vunpack.i.l.bf16 %v2298_v8  ;;  %v2303_v7 = vpop.permute.xlu0 %2302 }
 0x207   : > { %v2305_v15 = vunpack.i.h.bf16 %v2303_v7  ;;  %v2304_v0 = vunpack.i.l.bf16 %v2303_v7 }
 0x209   : > { %v846_v9 = vsel %vm586_vm5, %v2304_v0, %v2299_v6  ;;  %v847_v25 = vsel %vm586_vm5, %v2305_v15, %v2300_v5  ;;  %v842_v26 = vsel %vm586_vm5, %v2299_v6, %v2304_v0  ;;  %v843_v36 = vsel %vm586_vm5, %v2300_v5, %v2305_v15 }
 0x20a   : > { %v851_v47 = vmax.f32 %v819_v4, %v846_v9  ;;  %v853_v48 = vmax.f32 %v821_v22, %v847_v25  ;;  %v850_v49 = vmax.f32 %v818_v2, %v842_v26  ;;  %v852_v50 = vmax.f32 %v820_v3, %v843_v36 }
 0x20c   : > { %v2321_v51 = vpack.i.bf16 %v853_v48, %v851_v47  ;;  %v2316_v52 = vpack.i.bf16 %v852_v50, %v850_v49 }
 0x20d   : > { %v2308_v53 = vpop.permute.xlu1 %2307 }
 0x20e   : > { %v2310_v54 = vunpack.i.h.bf16 %v2308_v53  ;;  %v2309_v55 = vunpack.i.l.bf16 %v2308_v53  ;;  %v2313_v56 = vpop.permute.xlu0 %2312  ;;  %2322 = vrot.lane.b32.xlu0 %v2321_v51, %s2411_s29  ;;  %2317 = vrot.lane.b32.xlu1 %v2316_v52, %s2411_s29 }
 0x20f   : > { %v2315_v60 = vunpack.i.h.bf16 %v2313_v56  ;;  %v2314_v63 = vunpack.i.l.bf16 %v2313_v56 }
 0x211   : > { %v848_v20 = vsel %vm586_vm5, %v2314_v63, %v2309_v55  ;;  %v849_v62 = vsel %vm586_vm5, %v2315_v60, %v2310_v54  ;;  %v844_v2 = vsel %vm586_vm5, %v2309_v55, %v2314_v63  ;;  %v845_v3 = vsel %vm586_vm5, %v2310_v54, %v2315_v60 }
 0x212   : > { %v855_v4 = vmax.f32 %v823_v43, %v848_v20  ;;  %v857_v22 = vmax.f32 %v825_v44, %v849_v62  ;;  %v854_v57 = vmax.f32 %v822_v37, %v844_v2  ;;  %v856_v58 = vmax.f32 %v824_v42, %v845_v3 }
 0x214   : > { %v2331_v61 = vpack.i.bf16 %v857_v22, %v855_v4  ;;  %v2326_v8 = vpack.i.bf16 %v856_v58, %v854_v57 }
 0x216   : > { %2332 = vrot.lane.b32.xlu0 %v2331_v61, %s2411_s29  ;;  %2327 = vrot.lane.b32.xlu1 %v2326_v8, %s2411_s29 }
 0x280   : > { %v2323_v5 = vpop.permute.xlu0 %2322  ;;  %v2318_v6 = vpop.permute.xlu1 %2317 }
 0x281   : > { %v2325_v7 = vunpack.i.h.bf16 %v2323_v5  ;;  %v2324_v16 = vunpack.i.l.bf16 %v2323_v5  ;;  %v2320_v43 = vunpack.i.h.bf16 %v2318_v6  ;;  %v2319_v10 = vunpack.i.l.bf16 %v2318_v6 }
 0x283   : > { %v875_v17 = vsel %vm644_vm6, %v2320_v43, %v2325_v7  ;;  %v874_v11 = vsel %vm644_vm6, %v2319_v10, %v2324_v16  ;;  %v878_v1 = vsel %vm644_vm6, %v2324_v16, %v2319_v10  ;;  %v879_v37 = vsel %vm644_vm6, %v2325_v7, %v2320_v43  ;;  %v2362_v10 = vld [vmem:[%s3539_s3 + $0x4] ss:$12 sps:$4 sm:$0xff]  }
 0x284   : > { %v884_v42 = vmax.f32 %v852_v50, %v875_v17  ;;  %v882_v44 = vmax.f32 %v850_v49, %v874_v11  ;;  %v883_v12 = vmax.f32 %v851_v47, %v878_v1  ;;  %v885_v15 = vmax.f32 %v853_v48, %v879_v37  ;;  %1322 = vmatprep.mubr.bf16.mxu1 %v2362_v10  ;;  %v1229_v17 = vld [vmem:[%s3540_s4] sm:$0xff]  ;;  %v1230_v11 = vld [vmem:[%s3540_s4 + $0x8] sm:$0xff]  ;;  %v1231_v1 = vld [vmem:[%s3540_s4 + $0x10] sm:$0xff] }
 0x285   : > { %v1232_v37 = vld [vmem:[%s3540_s4 + $0x18] sm:$0xff] }
 0x286   : > { %v890_v0 = vpack.c.bf16 %v884_v42, %v882_v44  ;;  %v891_v9 = vpack.c.bf16 %v885_v15, %v883_v12  ;;  %v2368_v42 = vld [vmem:[%s3546_s10] ss:$8 sps:$4 sm:$0xff]   ;;  %v2370_v44 = vld [vmem:[%s3546_s10 + $0x4] ss:$8 sps:$4 sm:$0xff]   ;;  %v2373_v12 = vld [vmem:[%s3546_s10 + $0x14] ss:$8 sps:$4 sm:$0xff]  }
 0x287   : > { %1474 = vmatprep.subr.bf16.mxu0 %v2370_v44  ;;  %v2371_v15 = vld [vmem:[%s3546_s10 + $0x10] ss:$8 sps:$4 sm:$0xff]  }
 0x288   : > { %v2333_v25 = vpop.permute.xlu0 %2332  ;;  %v2328_v26 = vpop.permute.xlu1 %2327  ;;  %1022 = vmatprep.mubr.bf16.mxu0 %v891_v9 }
 0x289   : > { %v2335_v36 = vunpack.i.h.bf16 %v2333_v25  ;;  %v2334_v51 = vunpack.i.l.bf16 %v2333_v25  ;;  %v2330_v52 = vunpack.i.h.bf16 %v2328_v26  ;;  %v2329_v53 = vunpack.i.l.bf16 %v2328_v26  ;;  %1023 = vmatmul.mubr.bf16.vlgmr.msra.gmra.mrb[8].mxu0 %v890_v0  ;;  %v2951_v0 = vld [vmem:[%s3544_s8] sm:$0xff] }
 0x28a   : > { %1475 = vmatpush1.bf16.msra.mxu0 %v2368_v42  ;;  %v1050_v9 = vrot.slane %v2951_v0, %v2544_v19  ;;  %v1134_v19 = vrot.slane %v2951_v0, %v2562_v27  ;;  %v1154_v27 = vrot.slane %v2951_v0, %v2608_v40  ;;  %v1090_v44 = vrot.slane %v2951_v0, %v2558_v23 }
 0x28b   : > { %v880_v54 = vsel %vm644_vm6, %v2334_v51, %v2329_v53  ;;  %v881_v55 = vsel %vm644_vm6, %v2335_v36, %v2330_v52  ;;  %v876_v47 = vsel %vm644_vm6, %v2329_v53, %v2334_v51  ;;  %v877_v48 = vsel %vm644_vm6, %v2330_v52, %v2335_v36  ;;  %1476 = vmatprep.subr.bf16.mxu0 %v2373_v12 }
 0x28c   : > { %v887_v49 = vmax.f32 %v855_v4, %v880_v54  ;;  %v889_v50 = vmax.f32 %v857_v22, %v881_v55  ;;  %v886_v56 = vmax.f32 %v854_v57, %v876_v47  ;;  %v888_v60 = vmax.f32 %v856_v58, %v877_v48 }
 0x28e   : > { %v893_v63 = vpack.c.bf16 %v889_v50, %v887_v49  ;;  %v892_v20 = vpack.c.bf16 %v888_v60, %v886_v56  ;;  %1477 = vmatpush1.bf16.msra.mxu0 %v2371_v15 }
 0x290   : > { %1030 = vmatprep.mubr.bf16.mxu0 %v893_v63 }
 0x291   : > { %1031 = vmatmul.mubr.bf16.gmra.mrb[12].mxu0 %v892_v20 }
 0x292   : > { %1506 = vmatprep.mubr.bf16.mxu0 %v2413_v13 }
 0x35c   : > { %v2135_v62 = vpop.f32.mrb[8].mxu0 }
 0x35d   : > { %v2136_v2 = vpop.f32.mrb[9].mxu0 }
 0x35e   : > { %v2137_v3 = vadd.f32 %v2136_v2, %v2135_v62  ;;  %v2138_v61 = vpop.f32.mrb[10].mxu0 }
 0x35f   : > { %v2139_v8 = vpop.f32.mrb[11].mxu0 }
 0x360   : > { %v2140_v5 = vadd.f32 %v2139_v8, %v2138_v61  ;;  %1039 = vrot.lane.b32.xlu1 %v2137_v3, %s2414_s16  ;;  %v1070_v8 = vrot.slane %v2951_v0, %v2551_v21 }
 0x362   : > { %1041 = vrot.lane.b32.xlu0 %v2140_v5, %s2414_s16  ;;  %v1119_v6 = vpack.c.bf16 %v2140_v5, %v2137_v3 }
 0x364   : > { %v2141_v4 = vpop.f32.mrb[12].mxu0  ;;  %1123 = vrot.lane.b32.xlu1 %v2137_v3, %s2409_s27  ;;  %2147 = vmatprep.subr.bf16.mxu1 %v1119_v6 }
 0x365   : > { %v2142_v22 = vpop.f32.mrb[13].mxu0 }
 0x366   : > { %v2892_v57 = vadd.f32 %v2142_v22, %v2141_v4  ;;  %v2144_v58 = vpop.f32.mrb[14].mxu0  ;;  %1125 = vrot.lane.b32.xlu0 %v2140_v5, %s2409_s27 }
 0x367   : > { %v2145_v7 = vpop.f32.mrb[15].mxu0 }
 0x368   : > { %v2895_v16 = vadd.f32 %v2145_v7, %v2144_v58  ;;  %1059 = vrot.lane.b32.xlu1 %v2137_v3, %s2415_s20 }
 0x36a   : > { %1061 = vrot.lane.b32.xlu0 %v2140_v5, %s2415_s20  ;;  %v1120_v43 = vpack.c.bf16 %v2895_v16, %v2892_v57 }
 0x36c   : > { %1143 = vrot.lane.b32.xlu1 %v2137_v3, %s2416_s21 }
 0x36e   : > { %1145 = vrot.lane.b32.xlu0 %v2140_v5, %s2416_s21 }
 0x370   : > { %1079 = vrot.lane.b32.xlu1 %v2137_v3, %s2417_s22 }
 0x372   : > { %1081 = vrot.lane.b32.xlu0 %v2140_v5, %s2417_s22 }
 0x374   : > { %1163 = vrot.lane.b32.xlu1 %v2137_v3, %s2418_s12 }
 0x376   : > { %1165 = vrot.lane.b32.xlu0 %v2140_v5, %s2418_s12 }
 0x378   : > { %1099 = vrot.lane.b32.xlu1 %v2137_v3, %s2408_s26 }
 0x37a   : > { %1101 = vrot.lane.b32.xlu0 %v2140_v5, %s2408_s26 }
 0x37c   : > { %1043 = vrot.lane.b32.xlu1 %v2892_v57, %s2414_s16 }
 0x37e   : > { %1045 = vrot.lane.b32.xlu0 %v2895_v16, %s2414_s16 }
 0x380   : > { %1127 = vrot.lane.b32.xlu1 %v2892_v57, %s2409_s27 }
 0x382   : > { %1129 = vrot.lane.b32.xlu0 %v2895_v16, %s2409_s27 }
 0x384   : > { %1063 = vrot.lane.b32.xlu1 %v2892_v57, %s2415_s20 }
 0x386   : > { %1065 = vrot.lane.b32.xlu0 %v2895_v16, %s2415_s20 }
 0x388   : > { %1147 = vrot.lane.b32.xlu1 %v2892_v57, %s2416_s21 }
 0x38a   : > { %1149 = vrot.lane.b32.xlu0 %v2895_v16, %s2416_s21 }
 0x38c   : > { %1083 = vrot.lane.b32.xlu1 %v2892_v57, %s2417_s22 }
 0x38e   : > { %1085 = vrot.lane.b32.xlu0 %v2895_v16, %s2417_s22 }
 0x390   : > { %1167 = vrot.lane.b32.xlu1 %v2892_v57, %s2418_s12 }
 0x392   : > { %1169 = vrot.lane.b32.xlu0 %v2895_v16, %s2418_s12 }
 0x394   : > { %1103 = vrot.lane.b32.xlu1 %v2892_v57, %s2408_s26 }
 0x396   : > { %1105 = vrot.lane.b32.xlu0 %v2895_v16, %s2408_s26 }
 0x398   : > { %1183 = vrot.lane.b32.xlu1 %v2137_v3, %s2419_s30 }
 0x39a   : > { %1185 = vrot.lane.b32.xlu0 %v2140_v5, %s2419_s30 }
 0x39c   : > { %1187 = vrot.lane.b32.xlu1 %v2892_v57, %s2419_s30 }
 0x39e   : > { %1189 = vrot.lane.b32.xlu0 %v2895_v16, %s2419_s30 }
 0x3a0   : > { %1235 = vperm.xlu1 %2295, %v1229_v17  }
 0x3a2   : > { %1240 = vperm.xlu0 %2294, %v1230_v11  }
 0x3a4   : > { %1245 = vperm.xlu1 %2295, %v1231_v1  }
 0x3a6   : > { %1250 = vperm.xlu0 %2294, %v1232_v37  }
 0x3d2   : > { %v1040_v25 = vpop.permute.xlu1 %1039 }
 0x3d3   : > { %v1051_v36 = vmul.f32 %v1050_v9, %v1040_v25 }
 0x3d4   : > { %v1042_v26 = vpop.permute.xlu0 %1041 }
 0x3d5   : > { %v1052_v51 = vmul.f32 %v1050_v9, %v1042_v26 }
 0x3d6   : > { %v1124_v52 = vpop.permute.xlu1 %1123 }
 0x3d7   : > { %v1055_v53 = vpack.c.bf16 %v1052_v51, %v1051_v36  ;;  %v1135_v4 = vmul.f32 %v1134_v19, %v1124_v52 }
 0x3d8   : > { %v1126_v54 = vpop.permute.xlu0 %1125 }
 0x3d9   : > { %2148 = vmatpush3.bf16.msra.mxu1 %v1055_v53  ;;  %v1136_v3 = vmul.f32 %v1134_v19, %v1126_v54 }
 0x3da   : > { %v1060_v55 = vpop.permute.xlu1 %1059  ;;  %2149 = vmatprep.subr.bf16.mxu1 %v1120_v43 }
 0x3db   : > { %v1139_v7 = vpack.c.bf16 %v1136_v3, %v1135_v4  ;;  %v1071_v43 = vmul.f32 %v1070_v8, %v1060_v55  ;;  %v1174_v55 = vrot.slane %v2951_v0, %v2610_v41 }
 0x3dc   : > { %v1062_v47 = vpop.permute.xlu0 %1061 }
 0x3dd   : > { %v1072_v57 = vmul.f32 %v1070_v8, %v1062_v47 }
 0x3de   : > { %v1144_v48 = vpop.permute.xlu1 %1143 }
 0x3df   : > { %v1075_v1 = vpack.c.bf16 %v1072_v57, %v1071_v43 }
 0x3e0   : > { %v1146_v49 = vpop.permute.xlu0 %1145 }
 0x3e1   : > { %v1156_v21 = vmul.f32 %v1154_v27, %v1146_v49 }
 0x3e2   : > { %v1080_v50 = vpop.permute.xlu1 %1079 }
 0x3e3   : > { %v1091_v40 = vmul.f32 %v1090_v44, %v1080_v50 }
 0x3e4   : > { %v1082_v56 = vpop.permute.xlu0 %1081 }
 0x3e5   : > { %v1092_v26 = vmul.f32 %v1090_v44, %v1082_v56 }
 0x3e6   : > { %v1164_v60 = vpop.permute.xlu1 %1163 }
 0x3e7   : > { %v1095_v23 = vpack.c.bf16 %v1092_v26, %v1091_v40  ;;  %v2374_v26 = vld [vmem:[%s3546_s10 + $0x20] ss:$8 sps:$4 sm:$0xff]  }
 0x3e8   : > { %v1166_v63 = vpop.permute.xlu0 %1165  ;;  %v2380_v40 = vld [vmem:[%s3546_s10 + $0x40] ss:$8 sps:$4 sm:$0xff]  }
 0x3ea   : > { %v1100_v20 = vpop.permute.xlu1 %1099 }
 0x3ec   : > { %v1102_v62 = vpop.permute.xlu0 %1101 }
 0x3ee   : > { %v1044_v2 = vpop.permute.xlu1 %1043 }
 0x3ef   : > { %v1053_v5 = vmul.f32 %v1050_v9, %v1044_v2 }
 0x3f0   : > { %v1046_v61 = vpop.permute.xlu0 %1045 }
 0x3f1   : > { %v1054_v6 = vmul.f32 %v1050_v9, %v1046_v61  ;;  %v1155_v9 = vmul.f32 %v1154_v27, %v1144_v48  ;;  %v1110_v48 = vrot.slane %v2951_v0, %v2560_v24  ;;  %v1175_v61 = vmul.f32 %v1174_v55, %v1164_v60  ;;  %v2086_v60 = vld [vmem:[%s3544_s8 + $0x8] ss:$0 sm:$0xff] }
 0x3f2   : > { %v1128_v22 = vpop.permute.xlu1 %1127 }
 0x3f3   : > { %v1056_v58 = vpack.c.bf16 %v1054_v6, %v1053_v5  ;;  %v1137_v10 = vmul.f32 %v1134_v19, %v1128_v22  ;;  %v1159_v51 = vpack.c.bf16 %v1156_v21, %v1155_v9  ;;  %v1111_v41 = vmul.f32 %v1110_v48, %v1100_v20  ;;  %v2360_v20 = vld [vmem:[%s3539_s3] ss:$12 sps:$4 sm:$0xff]   ;;  %v2366_v9 = vld [vmem:[%s3539_s3 + $0x8] ss:$12 sps:$4 sm:$0xff]  }
 0x3f4   : > { %v1130_v16 = vpop.permute.xlu0 %1129 }
 0x3f5   : > { %v1138_v17 = vmul.f32 %v1134_v19, %v1130_v16  ;;  %2150 = vmatpush3.bf16.msra.mxu1 %v1056_v58  ;;  %v1176_v19 = vmul.f32 %v1174_v55, %v1166_v63 }
 0x3f6   : > { %v1064_v11 = vpop.permute.xlu1 %1063  ;;  %2151 = vmatprep.subr.bf16.mxu1 %v1139_v7 }
 0x3f7   : > { %v1140_v37 = vpack.c.bf16 %v1138_v17, %v1137_v10  ;;  %v1073_v12 = vmul.f32 %v1070_v8, %v1064_v11  ;;  %v1179_v6 = vpack.c.bf16 %v1176_v19, %v1175_v61  ;;  %v2363_v11 = vld [vmem:[%s3539_s3 + $0x1c] ss:$12 sps:$4 sm:$0xff]  }
 0x3f8   : > { %v1066_v42 = vpop.permute.xlu0 %1065  ;;  %v2391_v19 = vld [vmem:[%s3546_s10 + $0x74] ss:$8 sps:$4 sm:$0xff]  }
 0x3f9   : > { %v1074_v15 = vmul.f32 %v1070_v8, %v1066_v42  ;;  %2152 = vmatpush3.bf16.msra.mxu1 %v1075_v1  ;;  %v1112_v8 = vmul.f32 %v1110_v48, %v1102_v62 }
 0x3fa   : > { %v1148_v25 = vpop.permute.xlu1 %1147  ;;  %2153 = vmatprep.subr.bf16.mxu1 %v1140_v37 }
 0x3fb   : > { %v1076_v36 = vpack.c.bf16 %v1074_v15, %v1073_v12  ;;  %v1157_v53 = vmul.f32 %v1154_v27, %v1148_v25  ;;  %v1115_v63 = vpack.c.bf16 %v1112_v8, %v1111_v41  ;;  %v2365_v15 = vld [vmem:[%s3539_s3 + $0x18] ss:$12 sps:$4 sm:$0xff]   ;;  %v2367_v25 = vld [vmem:[%s3539_s3 + $0x20] ss:$12 sps:$4 sm:$0xff]  }
 0x3fc   : > { %v1150_v52 = vpop.permute.xlu0 %1149 }
 0x3fd   : > { %v1158_v54 = vmul.f32 %v1154_v27, %v1150_v52  ;;  %2154 = vmatpush3.bf16.msra.mxu1 %v1076_v36  ;;  %v2376_v36 = vld [vmem:[%s3546_s10 + $0x24] ss:$8 sps:$4 sm:$0xff]   ;;  %v2377_v52 = vld [vmem:[%s3546_s10 + $0x30] ss:$8 sps:$4 sm:$0xff]  }
 0x3fe   : > { %v1084_v47 = vpop.permute.xlu1 %1083  ;;  %2155 = vmatprep.subr.bf16.mxu1 %v1159_v51  ;;  %1478 = vmatprep.subr.bf16.mxu0 %v2376_v36  ;;  %v2379_v51 = vld [vmem:[%s3546_s10 + $0x34] ss:$8 sps:$4 sm:$0xff]  }
 0x3ff   : > { %v1160_v49 = vpack.c.bf16 %v1158_v54, %v1157_v53  ;;  %v1093_v56 = vmul.f32 %v1090_v44, %v1084_v47  ;;  %1479 = vmatpush1.bf16.msra.mxu0 %v2374_v26  ;;  %v2382_v53 = vld [vmem:[%s3546_s10 + $0x44] ss:$8 sps:$4 sm:$0xff]   ;;  %v2385_v54 = vld [vmem:[%s3546_s10 + $0x54] ss:$8 sps:$4 sm:$0xff]  }
 0x400   : > { %v1086_v2 = vpop.permute.xlu0 %1085  ;;  %1480 = vmatprep.subr.bf16.mxu0 %v2379_v51  ;;  %v2388_v47 = vld [vmem:[%s3546_s10 + $0x64] ss:$8 sps:$4 sm:$0xff]  }
 0x401   : > { %v1094_v3 = vmul.f32 %v1090_v44, %v1086_v2  ;;  %2156 = vmatpush3.bf16.msra.mxu1 %v1095_v23  ;;  %v2386_v23 = vld [vmem:[%s3546_s10 + $0x60] ss:$8 sps:$4 sm:$0xff]  }
 0x402   : > { %v1168_v50 = vpop.permute.xlu1 %1167  ;;  %2157 = vmatprep.subr.bf16.mxu1 %v1160_v49  ;;  %v2389_v49 = vld [vmem:[%s3546_s10 + $0x70] ss:$8 sps:$4 sm:$0xff]  }
 0x403   : > { %v1096_v5 = vpack.c.bf16 %v1094_v3, %v1093_v56  ;;  %v1177_v22 = vmul.f32 %v1174_v55, %v1168_v50  ;;  %1481 = vmatpush1.bf16.msra.mxu0 %v2377_v52 }
 0x404   : > { %v1170_v4 = vpop.permute.xlu0 %1169  ;;  %1482 = vmatprep.subr.bf16.mxu0 %v2382_v53 }
 0x405   : > { %v1178_v57 = vmul.f32 %v1174_v55, %v1170_v4  ;;  %2158 = vmatpush3.bf16.msra.mxu1 %v1096_v5  ;;  %v2383_v55 = vld [vmem:[%s3546_s10 + $0x50] ss:$8 sps:$4 sm:$0xff]  }
 0x406   : > { %v1104_v58 = vpop.permute.xlu1 %1103  ;;  %2159 = vmatprep.subr.bf16.mxu1 %v1179_v6 }
 0x407   : > { %v1180_v7 = vpack.c.bf16 %v1178_v57, %v1177_v22  ;;  %v1113_v24 = vmul.f32 %v1110_v48, %v1104_v58  ;;  %1483 = vmatpush1.bf16.msra.mxu0 %v2380_v40 }
 0x408   : > { %v1106_v16 = vpop.permute.xlu0 %1105  ;;  %1484 = vmatprep.subr.bf16.mxu0 %v2385_v54 }
 0x409   : > { %v1114_v0 = vmul.f32 %v1110_v48, %v1106_v16  ;;  %2160 = vmatpush3.bf16.msra.mxu1 %v1115_v63 }
 0x40a   : > { %v1184_v62 = vpop.permute.xlu1 %1183  ;;  %2161 = vmatprep.subr.bf16.mxu1 %v1180_v7 }
 0x40b   : > { %v1116_v43 = vpack.c.bf16 %v1114_v0, %v1113_v24  ;;  %v1195_v17 = vmul.f32 %v2086_v60, %v1184_v62  ;;  %1485 = vmatpush1.bf16.msra.mxu0 %v2383_v55 }
 0x40c   : > { %v1186_v10 = vpop.permute.xlu0 %1185  ;;  %1486 = vmatprep.subr.bf16.mxu0 %v2388_v47 }
 0x40d   : > { %v1196_v27 = vmul.f32 %v2086_v60, %v1186_v10  ;;  %2162 = vmatpush3.bf16.msra.mxu1 %v1116_v43 }
 0x40e   : > { %v1188_v1 = vpop.permute.xlu1 %1187 }
 0x40f   : > { %v1199_v37 = vpack.c.bf16 %v1196_v27, %v1195_v17  ;;  %v1197_v42 = vmul.f32 %v2086_v60, %v1188_v1  ;;  %1487 = vmatpush1.bf16.msra.mxu0 %v2386_v23 }
 0x410   : > { %v1190_v21 = vpop.permute.xlu0 %1189  ;;  %1323 = vmatmul.mubr.bf16.vlgmr.msra.gmra.mrb[0].mxu1 %v2360_v20  ;;  %1488 = vmatprep.subr.bf16.mxu0 %v2391_v19  ;;  %v3170_v19 = vld [vmem:[%s3541_s5] sm:$0xff] }
 0x411   : > { %v1198_v44 = vmul.f32 %v2086_v60, %v1190_v21  ;;  %2179 = vmatprep.subr.bf16.mxu1 %v1199_v37  ;;  %1330 = vmatprep.mubr.bf16.mxu1 %v2363_v11 }
 0x412   : > { %2180 = vmatpush3.bf16.msra.mxu1 %v1199_v37 }
 0x413   : > { %v1200_v12 = vpack.c.bf16 %v1198_v44, %v1197_v42  ;;  %1489 = vmatpush1.bf16.msra.mxu0 %v2389_v49 }
 0x415   : > { %2181 = vmatprep.subr.bf16.mxu1 %v1200_v12 }
 0x416   : > { %2182 = vmatpush3.bf16.msra.mxu1 %v1200_v12 }
 0x418   : > { %1331 = vmatmul.mubr.bf16.gmra.mrb[4].mxu1 %v2365_v15 }
 0x419   : > { %2183 = vmatprep.mubr.msk.bf16.mxu1 %vm1283_vm9, %v2366_v9 }
 0x41f   : > { %v1236_v8 = vpop.permute.xlu1 %1235 }
 0x420   : > { %2184 = vmatmul.mubr.msk.bf16.vlgmr.msra.gmra.mrb[8].mxu1 %vm1283_vm9, %v2367_v25 }
 0x421   : > { %v1241_v4 = vpop.permute.xlu0 %1240 }
 0x423   : > { %v1246_v63 = vpop.permute.xlu1 %1245 }
 0x425   : > { %v1251_v16 = vpop.permute.xlu0 %1250 }
 0x4e3   : > { %v2163_v2 = vpop.f32.mrb[0].mxu1 }
 0x4e4   : > { %v2164_v48 = vpop.f32.mrb[1].mxu1 }
 0x4e5   : > { %v2165_v56 = vadd.f32 %v2164_v48, %v2163_v2  ;;  %v2166_v3 = vpop.f32.mrb[2].mxu1  ;;  %v2112_v2 = vcombine.high %v3170_v19, %v3170_v19 }
 0x4e6   : > { %v2167_v61 = vpop.f32.mrb[3].mxu1 }
 0x4e7   : > { %v2168_v50 = vadd.f32 %v2167_v61, %v2166_v3  ;;  %v1325_v0 = vadd.f32 %v2165_v56, %v1236_v8  ;;  %1944 = vmatprep.mubr.bf16.mxu1 %v2112_v2 }
 0x4e9   : > { %v1328_v17 = vadd.f32 %v2168_v50, %v1241_v4  ;;  %v1893_v50 = vld [vmem:[%s3542_s6] sm:$0xff] }
 0x4eb   : > { %v2169_v5 = vpop.f32.mrb[4].mxu1 }
 0x4ec   : > { %v2170_v6 = vpop.f32.mrb[5].mxu1 }
 0x4ed   : > { %v2171_v41 = vadd.f32 %v2170_v6, %v2169_v5  ;;  %v2172_v22 = vpop.f32.mrb[6].mxu1 }
 0x4ee   : > { %v2173_v57 = vpop.f32.mrb[7].mxu1 }
 0x4ef   : > { %v2174_v58 = vadd.f32 %v2173_v57, %v2172_v22  ;;  %v1333_v7 = vadd.f32 %v2171_v41, %v1246_v63 }
 0x4f1   : > { %v1336_v43 = vadd.f32 %v2174_v58, %v1251_v16 }
 0x4f3   : > { %v2185_v24 = vpop.f32.mrb[8].mxu1 }
 0x4f4   : > { %v1382_v60 = vadd.f32 %v2185_v24, %v1333_v7  ;;  %v1373_v62 = vpop.f32.mrb[9].mxu1 }
 0x4f5   : > { %v1374_v10 = vadd.f32 %v1373_v62, %v1325_v0  ;;  %v2186_v20 = vpop.f32.mrb[10].mxu1 }
 0x4f6   : > { %v1385_v27 = vadd.f32 %v2186_v20, %v1336_v43  ;;  %v1376_v11 = vpop.f32.mrb[11].mxu1  ;;  %v1390_v37 = vmax.f32 %v1382_v60, 0.0 }
 0x4f7   : > { %v1377_v1 = vadd.f32 %v1376_v11, %v1328_v17  ;;  %v1388_v42 = vmax.f32 %v1374_v10, 0.0 }
 0x4f8   : > { %v1391_v21 = vmax.f32 %v1385_v27, 0.0 }
 0x4f9   : > { %v1389_v44 = vmax.f32 %v1377_v1, 0.0 }
 0x4fa   : > { %v1393_v12 = vpack.c.bf16 %v1391_v21, %v1390_v37 }
 0x4fb   : > { %v1392_v15 = vpack.c.bf16 %v1389_v44, %v1388_v42 }
 0x4fd   : > { %1507 = vmatmul.mubr.bf16.vlgmr.msra.gmra.mrb[16].mxu0 %v1392_v15 }
 0x4fe   : > { %1516 = vmatprep.mubr.bf16.mxu0 %v2413_v13 }
 0x505   : > { %1517 = vmatmul.mubr.bf16.gmra.mrb[20].mxu0 %v1393_v12 }
 0x506   : > { %1985 = vmatprep.mubr.bf16.mxu0 %v2413_v13 }
 0x5d0   : > { %v3025_v9 = vpop.f32.mrb[16].mxu0 }
 0x5d1   : > { %1527 = vrot.lane.b32.xlu1 %v3025_v9, %s2406_s24  ;;  %v3029_v25 = vpop.f32.mrb[17].mxu0 }
 0x5d2   : > { %v3031_v26 = vpop.f32.mrb[18].mxu0 }
 0x5d3   : > { %1529 = vrot.lane.b32.xlu0 %v3031_v26, %s2406_s24  ;;  %v3035_v36 = vpop.f32.mrb[19].mxu0 }
 0x5d5   : > { %1567 = vrot.lane.b32.xlu1 %v3025_v9, %s2405_s23 }
 0x5d7   : > { %1569 = vrot.lane.b32.xlu0 %v3031_v26, %s2405_s23 }
 0x5d8   : > { %v3045_v52 = vpop.f32.mrb[20].mxu0 }
 0x5d9   : > { %1607 = vrot.lane.b32.xlu1 %v3025_v9, %s2407_s25  ;;  %v3049_v40 = vpop.f32.mrb[21].mxu0 }
 0x5da   : > { %v3051_v53 = vpop.f32.mrb[22].mxu0 }
 0x5db   : > { %1609 = vrot.lane.b32.xlu0 %v3031_v26, %s2407_s25  ;;  %v3055_v54 = vpop.f32.mrb[23].mxu0 }
 0x5dd   : > { %1647 = vrot.lane.b32.xlu1 %v3025_v9, %s2408_s26 }
 0x5df   : > { %1649 = vrot.lane.b32.xlu0 %v3031_v26, %s2408_s26 }
 0x5e1   : > { %1695 = vrot.lane.b32.xlu1 %v3025_v9, %s2409_s27 }
 0x5e3   : > { %1697 = vrot.lane.b32.xlu0 %v3031_v26, %s2409_s27 }
 0x5e5   : > { %1735 = vrot.lane.b32.xlu1 %v3025_v9, %s2410_s28 }
 0x5e7   : > { %1737 = vrot.lane.b32.xlu0 %v3031_v26, %s2410_s28 }
 0x5e9   : > { %1535 = vrot.lane.b32.xlu1 %v3029_v25, %s2406_s24 }
 0x5eb   : > { %1537 = vrot.lane.b32.xlu0 %v3035_v36, %s2406_s24 }
 0x5ed   : > { %1575 = vrot.lane.b32.xlu1 %v3029_v25, %s2405_s23 }
 0x5ef   : > { %1577 = vrot.lane.b32.xlu0 %v3035_v36, %s2405_s23 }
 0x5f1   : > { %1615 = vrot.lane.b32.xlu1 %v3029_v25, %s2407_s25 }
 0x5f3   : > { %1617 = vrot.lane.b32.xlu0 %v3035_v36, %s2407_s25 }
 0x5f5   : > { %1655 = vrot.lane.b32.xlu1 %v3029_v25, %s2408_s26 }
 0x5f7   : > { %1657 = vrot.lane.b32.xlu0 %v3035_v36, %s2408_s26 }
 0x5f9   : > { %1703 = vrot.lane.b32.xlu1 %v3029_v25, %s2409_s27 }
 0x5fb   : > { %1705 = vrot.lane.b32.xlu0 %v3035_v36, %s2409_s27 }
 0x5fd   : > { %1531 = vrot.lane.b32.xlu1 %v3045_v52, %s2406_s24 }
 0x5ff   : > { %1533 = vrot.lane.b32.xlu0 %v3051_v53, %s2406_s24 }
 0x601   : > { %1571 = vrot.lane.b32.xlu1 %v3045_v52, %s2405_s23 }
 0x603   : > { %1573 = vrot.lane.b32.xlu0 %v3051_v53, %s2405_s23 }
 0x605   : > { %1611 = vrot.lane.b32.xlu1 %v3045_v52, %s2407_s25 }
 0x607   : > { %1613 = vrot.lane.b32.xlu0 %v3051_v53, %s2407_s25 }
 0x609   : > { %1651 = vrot.lane.b32.xlu1 %v3045_v52, %s2408_s26 }
 0x60b   : > { %1653 = vrot.lane.b32.xlu0 %v3051_v53, %s2408_s26 }
 0x60d   : > { %1699 = vrot.lane.b32.xlu1 %v3045_v52, %s2409_s27 }
 0x60f   : > { %1701 = vrot.lane.b32.xlu0 %v3051_v53, %s2409_s27 }
 0x611   : > { %1539 = vrot.lane.b32.xlu1 %v3049_v40, %s2406_s24 }
 0x613   : > { %1541 = vrot.lane.b32.xlu0 %v3055_v54, %s2406_s24 }
 0x615   : > { %1743 = vrot.lane.b32.xlu1 %v3029_v25, %s2410_s28 }
 0x617   : > { %1745 = vrot.lane.b32.xlu0 %v3035_v36, %s2410_s28 }
 0x619   : > { %1579 = vrot.lane.b32.xlu1 %v3049_v40, %s2405_s23 }
 0x61b   : > { %1581 = vrot.lane.b32.xlu0 %v3055_v54, %s2405_s23  ;;  %s3551_s23 = smov 111  }
 0x61d   : > { %1619 = vrot.lane.b32.xlu1 %v3049_v40, %s2407_s25 }
 0x61f   : > { %1741 = vrot.lane.b32.xlu0 %v3051_v53, %s2410_s28 }
 0x621   : > { %1659 = vrot.lane.b32.xlu1 %v3049_v40, %s2408_s26 }
 0x623   : > { %1621 = vrot.lane.b32.xlu0 %v3055_v54, %s2407_s25 }
 0x625   : > { %1707 = vrot.lane.b32.xlu1 %v3049_v40, %s2409_s27 }
 0x627   : > { %1777 = vrot.lane.b32.xlu0 %v3031_v26, %s2411_s29 }
 0x629   : > { %1739 = vrot.lane.b32.xlu1 %v3045_v52, %s2410_s28 }
 0x62b   : > { %1661 = vrot.lane.b32.xlu0 %v3055_v54, %s2408_s26 }
 0x62d   : > { %1747 = vrot.lane.b32.xlu1 %v3049_v40, %s2410_s28 }
 0x62f   : > { %1785 = vrot.lane.b32.xlu0 %v3035_v36, %s2411_s29 }
 0x631   : > { %1775 = vrot.lane.b32.xlu1 %v3025_v9, %s2411_s29 }
 0x633   : > { %1817 = vrot.lane.b32.xlu0 %v3031_v26, %s3551_s23 }
 0x635   : > { %1783 = vrot.lane.b32.xlu1 %v3029_v25, %s2411_s29 }
 0x637   : > { %1825 = vrot.lane.b32.xlu0 %v3035_v36, %s3551_s23 }
 0x639   : > { %1815 = vrot.lane.b32.xlu1 %v3025_v9, %s3551_s23 }
 0x63b   : > { %1709 = vrot.lane.b32.xlu0 %v3055_v54, %s2409_s27 }
 0x63d   : > { %1823 = vrot.lane.b32.xlu1 %v3029_v25, %s3551_s23 }
 0x63f   : > { %1781 = vrot.lane.b32.xlu0 %v3051_v53, %s2411_s29 }
 0x641   : > { %1779 = vrot.lane.b32.xlu1 %v3045_v52, %s2411_s29 }
 0x643   : > { %v1528_v23 = vpop.permute.xlu1 %1527  ;;  %1749 = vrot.lane.b32.xlu0 %v3055_v54, %s2410_s28 }
 0x645   : > { %v1530_v49 = vpop.permute.xlu0 %1529  ;;  %1787 = vrot.lane.b32.xlu1 %v3049_v40, %s2411_s29 }
 0x647   : > { %v3174_v48 = vpop.permute.xlu1 %1567  ;;  %1821 = vrot.lane.b32.xlu0 %v3051_v53, %s3551_s23 }
 0x649   : > { %v3178_v56 = vpop.permute.xlu0 %1569  ;;  %1819 = vrot.lane.b32.xlu1 %v3045_v52, %s3551_s23 }
 0x64b   : > { %v1608_v3 = vpop.permute.xlu1 %1607  ;;  %1789 = vrot.lane.b32.xlu0 %v3055_v54, %s2411_s29 }
 0x64d   : > { %v1610_v61 = vpop.permute.xlu0 %1609  ;;  %1827 = vrot.lane.b32.xlu1 %v3049_v40, %s3551_s23 }
 0x64f   : > { %v1648_v8 = vpop.permute.xlu1 %1647  ;;  %1829 = vrot.lane.b32.xlu0 %v3055_v54, %s3551_s23 }
 0x651   : > { %v1650_v5 = vpop.permute.xlu0 %1649  ;;  %1896 = vperm.xlu1 %2295, %v1893_v50  }
 0x653   : > { %v1696_v6 = vpop.permute.xlu1 %1695 }
 0x655   : > { %v1698_v4 = vpop.permute.xlu0 %1697 }
 0x657   : > { %v3191_v41 = vpop.permute.xlu1 %1735 }
 0x659   : > { %v3193_v22 = vpop.permute.xlu0 %1737 }
 0x65b   : > { %v1536_v57 = vpop.permute.xlu1 %1535 }
 0x65c   : > { %v1543_v58 = vsel %vm458_vm1, %v1528_v23, %v1536_v57  ;;  %v1547_v63 = vsel %vm458_vm1, %v1536_v57, %v1528_v23 }
 0x65d   : > { %v1538_v7 = vpop.permute.xlu0 %1537  ;;  %v1551_v0 = vmul.f32 %v1547_v63, %v2572_v29  ;;  %v1552_v60 = vmul.f32 %v1543_v58, %v2567_v28 }
 0x65e   : > { %v1544_v16 = vsel %vm458_vm1, %v1530_v49, %v1538_v7  ;;  %v1548_v24 = vsel %vm458_vm1, %v1538_v7, %v1530_v49 }
 0x65f   : > { %v1553_v62 = vmul.f32 %v1548_v24, %v2572_v29  ;;  %v1554_v43 = vmul.f32 %v1544_v16, %v2567_v28  ;;  %v1576_v10 = vpop.permute.xlu1 %1575 }
 0x660   : > { %v1587_v20 = vsel %vm487_vm2, %v1576_v10, %v3174_v48  ;;  %v1583_v13 = vsel %vm487_vm2, %v3174_v48, %v1576_v10 }
 0x661   : > { %v1559_v17 = vpack.c.bf16 %v1553_v62, %v1551_v0  ;;  %v1578_v27 = vpop.permute.xlu0 %1577  ;;  %v1560_v11 = vpack.c.bf16 %v1554_v43, %v1552_v60  ;;  %v3214_v37 = vmul.f32 %v1587_v20, %v2580_v31  ;;  %v1592_v48 = vmul.f32 %v1583_v13, %v2576_v30 }
 0x662   : > { %v1588_v1 = vsel %vm487_vm2, %v1578_v27, %v3178_v56 }
 0x663   : > { %v3217_v21 = vmul.f32 %v1588_v1, %v2580_v31  ;;  %v1616_v42 = vpop.permute.xlu1 %1615  ;;  %1912 = vmatprep.subr.bf16.mxu1 %v1560_v11 }
 0x664   : > { %v1623_v44 = vsel %vm516_vm3, %v1608_v3, %v1616_v42  ;;  %v1627_v12 = vsel %vm516_vm3, %v1616_v42, %v1608_v3  ;;  %1913 = vmatpush1.bf16.msra.mxu1 %v1559_v17 }
 0x665   : > { %v1618_v23 = vpop.permute.xlu0 %1617  ;;  %v3230_v50 = vmul.f32 %v1627_v12, %v2589_v33  ;;  %v3233_v57 = vmul.f32 %v1623_v44, %v2585_v32 }
 0x666   : > { %v1624_v49 = vsel %vm516_vm3, %v1610_v61, %v1618_v23  ;;  %v1628_v2 = vsel %vm516_vm3, %v1618_v23, %v1610_v61 }
 0x667   : > { %v3236_v58 = vmul.f32 %v1628_v2, %v2589_v33  ;;  %v3239_v3 = vmul.f32 %v1624_v49, %v2585_v32  ;;  %v1656_v63 = vpop.permute.xlu1 %1655 }
 0x668   : > { %v1663_v7 = vsel %vm545_vm4, %v1648_v8, %v1656_v63  ;;  %v1667_v16 = vsel %vm545_vm4, %v1656_v63, %v1648_v8 }
 0x669   : > { %v1658_v24 = vpop.permute.xlu0 %1657  ;;  %v3254_v43 = vmul.f32 %v1667_v16, %v2597_v35  ;;  %v3257_v20 = vmul.f32 %v1663_v7, %v2593_v34 }
 0x66a   : > { %v1664_v60 = vsel %vm545_vm4, %v1650_v5, %v1658_v24  ;;  %v1668_v62 = vsel %vm545_vm4, %v1658_v24, %v1650_v5  ;;  %v1584_v24 = vsel %vm487_vm2, %v3178_v56, %v1578_v27 }
 0x66b   : > { %v3260_v8 = vmul.f32 %v1668_v62, %v2597_v35  ;;  %v3263_v17 = vmul.f32 %v1664_v60, %v2593_v34  ;;  %v1704_v11 = vpop.permute.xlu1 %1703  ;;  %v1594_v12 = vmul.f32 %v1584_v24, %v2576_v30 }
 0x66c   : > { %v1711_v1 = vsel %vm586_vm5, %v1696_v6, %v1704_v11  ;;  %v1715_v42 = vsel %vm586_vm5, %v1704_v11, %v1696_v6 }
 0x66d   : > { %v1706_v44 = vpop.permute.xlu0 %1705  ;;  %v3278_v2 = vmul.f32 %v1711_v1, %v2606_v39  ;;  %v3281_v63 = vmul.f32 %v1715_v42, %v2602_v38  ;;  %v1600_v13 = vpack.c.bf16 %v1594_v12, %v1592_v48 }
 0x66e   : > { %v1712_v23 = vsel %vm586_vm5, %v1698_v4, %v1706_v44  ;;  %v1716_v49 = vsel %vm586_vm5, %v1706_v44, %v1698_v4 }
 0x66f   : > { %v3284_v6 = vmul.f32 %v1712_v23, %v2606_v39  ;;  %v3287_v7 = vmul.f32 %v1716_v49, %v2602_v38  ;;  %v1532_v16 = vpop.permute.xlu1 %1531 }
 0x671   : > { %v1534_v60 = vpop.permute.xlu0 %1533 }
 0x673   : > { %v1572_v62 = vpop.permute.xlu1 %1571 }
 0x675   : > { %v1574_v11 = vpop.permute.xlu0 %1573 }
 0x677   : > { %v1612_v1 = vpop.permute.xlu1 %1611 }
 0x679   : > { %v1614_v44 = vpop.permute.xlu0 %1613 }
 0x67b   : > { %v3293_v42 = vpop.permute.xlu1 %1651 }
 0x67d   : > { %v3295_v55 = vpop.permute.xlu0 %1653 }
 0x67f   : > { %v3297_v23 = vpop.permute.xlu1 %1699 }
 0x681   : > { %v3299_v49 = vpop.permute.xlu0 %1701 }
 0x683   : > { %v1540_v47 = vpop.permute.xlu1 %1539 }
 0x684   : > { %v1545_v4 = vsel %vm458_vm1, %v1532_v16, %v1540_v47  ;;  %v1549_v51 = vsel %vm458_vm1, %v1540_v47, %v1532_v16 }
 0x685   : > { %v1542_v5 = vpop.permute.xlu0 %1541  ;;  %v1555_v27 = vmul.f32 %v1549_v51, %v2572_v29  ;;  %v1556_v0 = vmul.f32 %v1545_v4, %v2567_v28 }
 0x686   : > { %v1546_v61 = vsel %vm458_vm1, %v1534_v60, %v1542_v5  ;;  %v1550_v56 = vsel %vm458_vm1, %v1542_v5, %v1534_v60 }
 0x687   : > { %v1557_v15 = vmul.f32 %v1550_v56, %v2572_v29  ;;  %v1558_v47 = vmul.f32 %v1546_v61, %v2567_v28  ;;  %v1744_v16 = vpop.permute.xlu1 %1743 }
 0x688   : > { %v1751_v10 = vsel %vm615_vm7, %v3191_v41, %v1744_v16  ;;  %v1755_v24 = vsel %vm615_vm7, %v1744_v16, %v3191_v41 }
 0x689   : > { %v1561_v5 = vpack.c.bf16 %v1557_v15, %v1555_v27  ;;  %v1746_v60 = vpop.permute.xlu0 %1745  ;;  %v1562_v51 = vpack.c.bf16 %v1558_v47, %v1556_v0  ;;  %v3334_v61 = vmul.f32 %v1751_v10, %v2682_v45  ;;  %v3337_v4 = vmul.f32 %v1755_v24, %v2671_v14 }
 0x68a   : > { %v1752_v29 = vsel %vm615_vm7, %v3193_v22, %v1746_v60  ;;  %v1756_v28 = vsel %vm615_vm7, %v1746_v60, %v3193_v22 }
 0x68b   : > { %v3340_v41 = vmul.f32 %v1752_v29, %v2682_v45  ;;  %v3343_v15 = vmul.f32 %v1756_v28, %v2671_v14  ;;  %v1580_v0 = vpop.permute.xlu1 %1579  ;;  %1914 = vmatprep.subr.bf16.mxu1 %v1562_v51  ;;  %v3552_v51 = vpack.c.bf16 %v3217_v21, %v3214_v37 }
 0x68c   : > { %v1585_v56 = vsel %vm487_vm2, %v1572_v62, %v1580_v0  ;;  %v1589_v22 = vsel %vm487_vm2, %v1580_v0, %v1572_v62  ;;  %1915 = vmatpush1.bf16.msra.mxu1 %v1561_v5 }
 0x68d   : > { %v1767_v12 = vpack.c.bf16 %v3340_v41, %v3334_v61  ;;  %1916 = vmatprep.subr.bf16.mxu1 %v1600_v13  ;;  %v1582_v27 = vpop.permute.xlu0 %1581  ;;  %v1768_v47 = vpack.c.bf16 %v3343_v15, %v3337_v4  ;;  %v1595_v10 = vmul.f32 %v1589_v22, %v2580_v31  ;;  %v1596_v24 = vmul.f32 %v1585_v56, %v2576_v30 }
 0x68e   : > { %v1586_v16 = vsel %vm487_vm2, %v1574_v11, %v1582_v27  ;;  %v1590_v48 = vsel %vm487_vm2, %v1582_v27, %v1574_v11 }
 0x68f   : > { %v1597_v62 = vmul.f32 %v1590_v48, %v2580_v31  ;;  %v1598_v5 = vmul.f32 %v1586_v16, %v2576_v30  ;;  %v1620_v60 = vpop.permute.xlu1 %1619  ;;  %v3553_v30 = vpack.c.bf16 %v3239_v3, %v3233_v57  ;;  %v3554_v57 = vpack.c.bf16 %v3236_v58, %v3230_v50 }
 0x690   : > { %1917 = vmatpush1.bf16.msra.mxu1 %v3552_v51  ;;  %v1625_v11 = vsel %vm516_vm3, %v1612_v1, %v1620_v60  ;;  %v1629_v56 = vsel %vm516_vm3, %v1620_v60, %v1612_v1 }
 0x691   : > { %v1601_v29 = vpack.c.bf16 %v1597_v62, %v1595_v10  ;;  %v3364_v28 = vpop.permute.xlu0 %1741  ;;  %v1602_v13 = vpack.c.bf16 %v1598_v5, %v1596_v24  ;;  %v1635_v22 = vmul.f32 %v1629_v56, %v2589_v33  ;;  %v1636_v27 = vmul.f32 %v1625_v11, %v2585_v32 }
 0x693   : > { %v1660_v0 = vpop.permute.xlu1 %1659  ;;  %1918 = vmatprep.subr.bf16.mxu1 %v1602_v13 }
 0x694   : > { %1919 = vmatpush1.bf16.msra.mxu1 %v1601_v29 }
 0x695   : > { %1920 = vmatprep.subr.bf16.mxu1 %v3553_v30  ;;  %v1622_v31 = vpop.permute.xlu0 %1621 }
 0x696   : > { %v1626_v37 = vsel %vm516_vm3, %v1614_v44, %v1622_v31  ;;  %v1630_v21 = vsel %vm516_vm3, %v1622_v31, %v1614_v44  ;;  %v1665_v44 = vsel %vm545_vm4, %v3293_v42, %v1660_v0 }
 0x697   : > { %v1637_v16 = vmul.f32 %v1630_v21, %v2589_v33  ;;  %v1638_v1 = vmul.f32 %v1626_v37, %v2585_v32  ;;  %v1708_v48 = vpop.permute.xlu1 %1707  ;;  %v1669_v33 = vsel %vm545_vm4, %v1660_v0, %v3293_v42  ;;  %v3555_v32 = vpack.c.bf16 %v3263_v17, %v3257_v20 }
 0x698   : > { %1921 = vmatpush1.bf16.msra.mxu1 %v3554_v57  ;;  %v1675_v60 = vmul.f32 %v1669_v33, %v2597_v35  ;;  %v1676_v51 = vmul.f32 %v1665_v44, %v2593_v34  ;;  %v3556_v20 = vpack.c.bf16 %v3260_v8, %v3254_v43  ;;  %v3559_v43 = vpack.c.bf16 %v3055_v54, %v3049_v40 }
 0x699   : > { %v1641_v3 = vpack.c.bf16 %v1637_v16, %v1635_v22  ;;  %v3384_v10 = vpop.permute.xlu0 %1777  ;;  %v1642_v24 = vpack.c.bf16 %v1638_v1, %v1636_v27  ;;  %v1713_v37 = vsel %vm586_vm5, %v3297_v23, %v1708_v48  ;;  %v3561_v54 = vpack.c.bf16 %v3287_v7, %v3281_v63  ;;  %v3446_v63 = vld [vmem:[%s3543_s7 + $0x10] ss:$0 sm:$0xff] }
 0x69b   : > { %v1740_v62 = vpop.permute.xlu1 %1739  ;;  %1922 = vmatprep.subr.bf16.mxu1 %v1642_v24 }
 0x69c   : > { %1923 = vmatpush1.bf16.msra.mxu1 %v1641_v3 }
 0x69d   : > { %1924 = vmatprep.subr.bf16.mxu1 %v3555_v32  ;;  %v1662_v50 = vpop.permute.xlu0 %1661 }
 0x69e   : > { %v1666_v58 = vsel %vm545_vm4, %v3295_v55, %v1662_v50  ;;  %v1670_v5 = vsel %vm545_vm4, %v1662_v50, %v3295_v55  ;;  %v3557_v55 = vpack.c.bf16 %v3035_v36, %v3029_v25  ;;  %v1717_v25 = vsel %vm586_vm5, %v1708_v48, %v3297_v23 }
 0x69f   : > { %v1677_v42 = vmul.f32 %v1670_v5, %v2597_v35  ;;  %v1678_v29 = vmul.f32 %v1666_v58, %v2593_v34  ;;  %v1748_v13 = vpop.permute.xlu1 %1747  ;;  %v3558_v34 = vpack.c.bf16 %v3031_v26, %v3025_v9  ;;  %v3560_v36 = vpack.c.bf16 %v3051_v53, %v3045_v52 }
 0x6a0   : > { %1925 = vmatpush1.bf16.msra.mxu1 %v3556_v20  ;;  %v1723_v53 = vmul.f32 %v1713_v37, %v2606_v39  ;;  %v1724_v23 = vmul.f32 %v1717_v25, %v2602_v38  ;;  %v3562_v48 = vpack.c.bf16 %v3284_v6, %v3278_v2  ;;  %v1753_v32 = vsel %vm615_vm7, %v1740_v62, %v1748_v13 }
 0x6a1   : > { %v1681_v17 = vpack.c.bf16 %v1677_v42, %v1675_v60  ;;  %v1786_v0 = vpop.permute.xlu0 %1785  ;;  %v1682_v11 = vpack.c.bf16 %v1678_v29, %v1676_v51  ;;  %v1757_v50 = vsel %vm615_vm7, %v1748_v13, %v1740_v62  ;;  %v1763_v6 = vmul.f32 %v1753_v32, %v2682_v45 }
 0x6a2   : > { %v1764_v42 = vmul.f32 %v1757_v50, %v2671_v14  ;;  %v1796_v62 = vsel %vm644_vm6, %v1786_v0, %v3384_v10 }
 0x6a3   : > { %v1776_v56 = vpop.permute.xlu1 %1775  ;;  %1926 = vmatprep.subr.bf16.mxu1 %v1682_v11  ;;  %v1792_v11 = vsel %vm644_vm6, %v3384_v10, %v1786_v0 }
 0x6a4   : > { %1927 = vmatpush1.bf16.msra.mxu1 %v1681_v17 }
 0x6a5   : > { %1928 = vmatprep.subr.bf16.mxu1 %v3557_v55  ;;  %v1818_v30 = vpop.permute.xlu0 %1817 }
 0x6a7   : > { %v1784_v31 = vpop.permute.xlu1 %1783 }
 0x6a8   : > { %1929 = vmatpush1.bf16.msra.mxu1 %v3558_v34  ;;  %v1795_v2 = vsel %vm644_vm6, %v1784_v31, %v1776_v56  ;;  %v1791_v20 = vsel %vm644_vm6, %v1776_v56, %v1784_v31 }
 0x6a9   : > { %v1826_v35 = vpop.permute.xlu0 %1825  ;;  %1930 = vmatprep.subr.bf16.mxu1 %v3559_v43  ;;  %v1800_v4 = vmul.f32 %v1795_v2, %v2686_v46  ;;  %v1799_v31 = vmul.f32 %v1791_v20, %v2702_v59 }
 0x6aa   : > { %v1832_v9 = vsel %vm673_vm8, %v1818_v30, %v1826_v35  ;;  %v1836_v26 = vsel %vm673_vm8, %v1826_v35, %v1818_v30 }
 0x6ab   : > { %v1816_v8 = vpop.permute.xlu1 %1815  ;;  %v1841_v7 = vmul.f32 %v3446_v63, %v1832_v9 }
 0x6ac   : > { %1931 = vmatpush1.bf16.msra.mxu1 %v3560_v36 }
 0x6ad   : > { %v1710_v40 = vpop.permute.xlu0 %1709  ;;  %1932 = vmatprep.subr.bf16.mxu1 %v3561_v54 }
 0x6ae   : > { %v1714_v21 = vsel %vm586_vm5, %v3299_v49, %v1710_v40  ;;  %v1718_v52 = vsel %vm586_vm5, %v1710_v40, %v3299_v49  ;;  %v3452_v49 = vld [vmem:[%s3543_s7 + $0x18] ss:$0 sm:$0xff] }
 0x6af   : > { %v1725_v22 = vmul.f32 %v1714_v21, %v2606_v39  ;;  %v1726_v27 = vmul.f32 %v1718_v52, %v2602_v38  ;;  %v1824_v16 = vpop.permute.xlu1 %1823  ;;  %v1842_v1 = vmul.f32 %v3452_v49, %v1836_v26 }
 0x6b0   : > { %v1831_v39 = vsel %vm673_vm8, %v1816_v8, %v1824_v16  ;;  %v1835_v38 = vsel %vm673_vm8, %v1824_v16, %v1816_v8  ;;  %1933 = vmatpush1.bf16.msra.mxu1 %v3562_v48 }
 0x6b1   : > { %v1729_v57 = vpack.c.bf16 %v1725_v22, %v1723_v53  ;;  %v1839_v3 = vmul.f32 %v3446_v63, %v1831_v39  ;;  %v1840_v24 = vmul.f32 %v3452_v49, %v1835_v38  ;;  %v1782_v44 = vpop.permute.xlu0 %1781  ;;  %v1730_v33 = vpack.c.bf16 %v1726_v27, %v1724_v23 }
 0x6b3   : > { %v1847_v58 = vpack.c.bf16 %v1841_v7, %v1839_v3  ;;  %v1780_v5 = vpop.permute.xlu1 %1779  ;;  %1934 = vmatprep.subr.bf16.mxu1 %v1730_v33  ;;  %v1848_v60 = vpack.c.bf16 %v1842_v1, %v1840_v24 }
 0x6b4   : > { %1935 = vmatpush1.bf16.msra.mxu1 %v1729_v57 }
 0x6b5   : > { %1953 = vmatprep.subr.bf16.mxu0 %v1848_v60  ;;  %v1750_v51 = vpop.permute.xlu0 %1749  ;;  %1936 = vmatprep.subr.bf16.mxu1 %v1768_v47 }
 0x6b6   : > { %v1754_v29 = vsel %vm615_vm7, %v3364_v28, %v1750_v51  ;;  %v1758_v13 = vsel %vm615_vm7, %v1750_v51, %v3364_v28  ;;  %1954 = vmatpush1.bf16.msra.mxu0 %v1847_v58  ;;  %v1802_v28 = vmul.f32 %v1796_v62, %v2686_v46 }
 0x6b7   : > { %v1765_v15 = vmul.f32 %v1754_v29, %v2682_v45  ;;  %v1766_v47 = vmul.f32 %v1758_v13, %v2671_v14  ;;  %v1788_v17 = vpop.permute.xlu1 %1787  ;;  %v1801_v14 = vmul.f32 %v1792_v11, %v2702_v59 }
 0x6b8   : > { %1937 = vmatpush1.bf16.msra.mxu1 %v1767_v12  ;;  %v1808_v45 = vpack.c.bf16 %v1802_v28, %v1800_v4  ;;  %v1793_v61 = vsel %vm644_vm6, %v1780_v5, %v1788_v17  ;;  %v1797_v41 = vsel %vm644_vm6, %v1788_v17, %v1780_v5 }
 0x6b9   : > { %v1769_v55 = vpack.c.bf16 %v1765_v15, %v1763_v6  ;;  %v1822_v30 = vpop.permute.xlu0 %1821  ;;  %v1770_v56 = vpack.c.bf16 %v1766_v47, %v1764_v42  ;;  %v1807_v10 = vpack.c.bf16 %v1801_v14, %v1799_v31  ;;  %v1803_v43 = vmul.f32 %v1793_v61, %v2702_v59 }
 0x6ba   : > { %v1804_v8 = vmul.f32 %v1797_v41, %v2686_v46 }
 0x6bb   : > { %v1820_v34 = vpop.permute.xlu1 %1819  ;;  %1938 = vmatprep.subr.bf16.mxu1 %v1770_v56 }
 0x6bc   : > { %1939 = vmatpush1.bf16.msra.mxu1 %v1769_v55 }
 0x6bd   : > { %v1790_v12 = vpop.permute.xlu0 %1789  ;;  %1940 = vmatprep.subr.bf16.mxu1 %v1808_v45 }
 0x6be   : > { %v1794_v0 = vsel %vm644_vm6, %v1782_v44, %v1790_v12  ;;  %v1798_v35 = vsel %vm644_vm6, %v1790_v12, %v1782_v44 }
 0x6bf   : > { %v1805_v37 = vmul.f32 %v1794_v0, %v2702_v59  ;;  %v1806_v25 = vmul.f32 %v1798_v35, %v2686_v46  ;;  %v1828_v36 = vpop.permute.xlu1 %1827  ;;  %v2111_v46 = vcombine.low %v3170_v19, %v3170_v19 }
 0x6c0   : > { %v1833_v9 = vsel %vm673_vm8, %v1820_v34, %v1828_v36  ;;  %v1837_v26 = vsel %vm673_vm8, %v1828_v36, %v1820_v34  ;;  %1941 = vmatpush1.bf16.msra.mxu1 %v1807_v10 }
 0x6c1   : > { %v1809_v40 = vpack.c.bf16 %v1805_v37, %v1803_v43  ;;  %v1830_v54 = vpop.permute.xlu0 %1829  ;;  %v1810_v21 = vpack.c.bf16 %v1806_v25, %v1804_v8  ;;  %v1843_v59 = vmul.f32 %v3446_v63, %v1833_v9  ;;  %v1844_v23 = vmul.f32 %v3452_v49, %v1837_v26 }
 0x6c2   : > { %v1834_v52 = vsel %vm673_vm8, %v1822_v30, %v1830_v54  ;;  %v1838_v53 = vsel %vm673_vm8, %v1830_v54, %v1822_v30 }
 0x6c3   : > { %v1845_v22 = vmul.f32 %v3446_v63, %v1834_v52  ;;  %v1846_v27 = vmul.f32 %v3452_v49, %v1838_v53  ;;  %1942 = vmatprep.subr.bf16.mxu1 %v1810_v21 }
 0x6c4   : > { %1943 = vmatpush1.bf16.msra.mxu1 %v1809_v40 }
 0x6c5   : > { %v1849_v16 = vpack.c.bf16 %v1845_v22, %v1843_v59  ;;  %v1850_v7 = vpack.c.bf16 %v1846_v27, %v1844_v23 }
 0x6c7   : > { %1945 = vmatmul.mubr.bf16.vlgmr.msra.gmra.mrb[12].mxu1 %v2111_v46  ;;  %1955 = vmatprep.subr.bf16.mxu0 %v1850_v7 }
 0x6c8   : > { %1956 = vmatpush1.bf16.msra.mxu0 %v1849_v16 }
 0x6cb   : > { %2114 = vmatmul.mubr.msk.bf16.vlgmr.msra.gmra.mrb[24].mxu0 %vm1283_vm9, %v2394_v18 }
 0x6d0   : > { %v1897_v39 = vpop.permute.xlu1 %1896 }
 0x79a   : > { %v1946_v19 = vpop.f32.mrb[12].mxu1 }
 0x79b   : > { %v1948_v1 = vpop.f32.mrb[13].mxu1  ;;  %v1947_v38 = vadd.f32 %v1946_v19, %v1897_v39 }
 0x79c   : > { %v1950_v63 = vpop.f32.mrb[14].mxu1  ;;  %v1949_v48 = vadd.f32 %v1948_v1, %v1897_v39 }
 0x79d   : > { %v1951_v49 = vpop.f32.mrb[15].mxu1 }
 0x79e   : > { %v1987_v57 = vpop.f32.mrb[24].mxu0 }
 0x79f   : > { %v1988_v3 = vadd.f32 %v1987_v57, %v1947_v38  ;;  %v1989_v24 = vpop.f32.mrb[25].mxu0 }
 0x7a0   : > { %v1990_v44 = vadd.f32 %v1989_v24, %v1949_v48  ;;  %v1991_v33 = vpop.f32.mrb[26].mxu0 }
 0x7a1   : > { %1994 = vst [vmem:[%s386_s15] sm:$0xff] %v1988_v3  ;;  %v1992_v32 = vpop.f32.mrb[27].mxu0 }
 0x7a2   : > { %1995 = vst [vmem:[%s386_s15 + $0x8] sm:$0xff] %v1990_v44 }
 0x7a3 PF: > { %s21_s17 = sadd.s32 1, %s2403_s17  }
 0x7a4   : > { %p18_p4 = scmp.ge.s32.totalorder %s21_s17, 4  }
 0x7a6   :  { %20 = sbr.rel (!%p18_p4) target bundleno = 1 (0x1), region = 94 }

</bundles_post_ra>
